<compile_context>
chip_gen: v7x
topology: tpu7x:2x2x1
jax: 0.10.0
libtpu: 0.0.40
codegen_flags: <defaults>
</compile_context>

<pallas_src>
import jax
import jax.numpy as jnp
import numpy as np
from jax.experimental import pallas as pl
from jax.experimental.pallas import tpu as pltpu


def _upsample_conv_add_kernel(xa_ref, xb_ref, w_ref, b_ref, x2_ref, o_ref,
                              win_ref, col_ref, pack_ref):
    """Fused per-(batch, row-tile) kernel.

    xa_ref  : (1, TH, W+2, Cin)   rows [t*TH, t*TH+TH) of the zero-padded input
    xb_ref  : (1, 2,  W+2, Cin)   2-row halo: rows [t*TH+TH, t*TH+TH+2)
    w_ref   : (9*Cin, 4*Cout)     packed sub-pixel conv weights
    b_ref   : (1, W*4*Cout)       bias tiled to the packed output layout
    x2_ref  : (1, TH, W*4*Cout)   skip tensor in packed layout
    o_ref   : (1, TH, W*4*Cout)   output in packed layout
    win_ref : VMEM (TH+2, W+2, Cin)   halo'd input window
    col_ref : VMEM (TH*W, 9*Cin)      im2col buffer (built once)
    pack_ref: VMEM (TH, W*4*Cout) f32 lane-dense accumulator
    """
    TH = xa_ref.shape[1]
    Wp = xa_ref.shape[2]
    Cin = xa_ref.shape[3]
    W = Wp - 2
    C4 = w_ref.shape[1]                       # 4 * Cout

    # Assemble the (TH+2)-row halo'd window once in VMEM.
    win_ref[0:TH] = xa_ref[0]
    win_ref[TH:TH + 2] = xb_ref[0]

    # Build the im2col LHS once; columns ordered (kh, kw, ci).
    for kh in range(3):
        for kw in range(3):
            j = kh * 3 + kw
            col_ref[:, j * Cin:(j + 1) * Cin] = (
                win_ref[kh:kh + TH, kw:kw + W, :].reshape(TH * W, Cin))

    # Single MXU matmul: (TH*W, 9*Cin) @ (9*Cin, 4*Cout), f32 accumulation.
    y = jnp.dot(col_ref[...], w_ref[...], preferred_element_type=jnp.float32)

    # Lane-pack (TH*W, 4*Cout) -> (TH, W*4*Cout) with static slices (a robust
    # equivalent of the minor-dim reshape) so the epilogue adds and the HBM
    # store are full-lane-width.  For realistic Cout (>=32) 4*Cout is already
    # lane-dense and this loop is short anyway.
    y3 = y.reshape(TH, W, C4)                 # splits the major dim only
    for c in range(W):
        pack_ref[:, c * C4:(c + 1) * C4] = y3[:, c, :]

    o_ref[0] = (pack_ref[...]
                + b_ref[...].astype(jnp.float32)
                + x2_ref[0].astype(jnp.float32)).astype(o_ref.dtype)


def _pack_subpixel_weights(weight_hwio):
    """Fold (3,3,Cin,Cout) conv weights into a (9*Cin, 4*Cout) matrix.

    Rows are ordered (kh, kw, ci) over the 3x3 window of the ORIGINAL grid
    (rows r-1..r+1, cols c-1..c+1); columns are ordered (pi, pj, co) over the
    four sub-pixel positions of the x2 upsampled output.

    Derivation (1-D): for output row 2r   -> w0*x[r-1] + (w1+w2)*x[r]
                      for output row 2r+1 -> (w0+w1)*x[r] + w2*x[r+1]
    and the same along columns.
    """
    w = weight_hwio
    Cin, Cout = w.shape[2], w.shape[3]
    z = jnp.zeros_like(w[0])                          # (3, Cin, Cout)
    # fold over output-row parity pi (taps on original rows r-1 / r / r+1)
    r0 = jnp.stack([w[0], w[1] + w[2], z], axis=0)    # pi = 0
    r1 = jnp.stack([z, w[0] + w[1], w[2]], axis=0)    # pi = 1
    rw = jnp.stack([r0, r1], axis=0)                  # (2, 3[kh], 3[kw], Cin, Cout)
    zc = jnp.zeros_like(rw[:, :, 0])
    # fold over output-col parity pj (taps on original cols c-1 / c / c+1)
    c0 = jnp.stack([rw[:, :, 0], rw[:, :, 1] + rw[:, :, 2], zc], axis=2)  # pj=0
    c1 = jnp.stack([zc, rw[:, :, 0] + rw[:, :, 1], rw[:, :, 2]], axis=2)  # pj=1
    weff = jnp.stack([c0, c1], axis=1)   # (2[pi], 2[pj], 3[kh], 3[kw], Cin, Cout)
    return jnp.transpose(weff, (2, 3, 4, 0, 1, 5)).reshape(9 * Cin, 4 * Cout)


def upsample_block(x1_nchw, x2_nchw, weight_hwio, bias, scale_factor=2,
                   tile_h=None):
    """Forward pass of UpSample (NCHW in / NCHW out, matching the PyTorch module).

    x1_nchw:     (N, Cin, H, W)       tensor to upsample
    x2_nchw:     (N, Cin//2, 2H, 2W)  skip tensor
    weight_hwio: (3, 3, Cin, Cin//2)  conv3x3 weights (HWIO)
    bias:        (Cin//2,)
    """
    if scale_factor != 2:
        # TODO(synk): other scale factors need a different sub-pixel split.
        raise NotImplementedError("fused kernel implements scale_factor=2")

    N, Cin, H, W = x1_nchw.shape
    Cout = weight_hwio.shape[-1]
    C4 = 4 * Cout
    Wp = W + 2

    if tile_h is None:
        tile_h = H
        for cand in (64, 32, 16, 8):
            if H % cand == 0:
                tile_h = cand
                break
    if H % tile_h != 0 or tile_h % 2 != 0 or (tile_h % 8 != 0 and tile_h != H):
        # TODO(synk): odd / non-multiple-of-8 H would need single-row halo specs.
        raise ValueError(f"unsupported tile_h={tile_h} for H={H}")
    TH = tile_h
    nT = H // TH
    dtype = x1_nchw.dtype

    # --- host-side packing (original resolution only; no upsampled copy) ---
    x1_pad = jnp.pad(jnp.transpose(x1_nchw, (0, 2, 3, 1)),
                     ((0, 0), (1, 1), (1, 1), (0, 0)))        # (N, H+2, W+2, Cin)
    # skip tensor re-packed to (n, r, (c, pi, pj, co)) = (N, H, W*4*Cout)
    x2_packed = jnp.transpose(
        x2_nchw.reshape(N, Cout, H, 2, W, 2),
        (0, 2, 4, 3, 5, 1)).reshape(N, H, W * C4)
    w_packed = _pack_subpixel_weights(weight_hwio).astype(dtype)
    b_packed = jnp.tile(bias, 4 * W).reshape(1, W * C4).astype(dtype)

    out_packed = pl.pallas_call(
        _upsample_conv_add_kernel,
        out_shape=jax.ShapeDtypeStruct((N, H, W * C4), dtype),
        grid_spec=pltpu.PrefetchScalarGridSpec(
            num_scalar_prefetch=0,
            grid=(N, nT),
            in_specs=[
                # TH-row body of the padded input: rows [t*TH, t*TH+TH)
                pl.BlockSpec((1, TH, Wp, Cin), lambda n, t: (n, t, 0, 0)),
                # 2-row halo: rows [t*TH+TH, t*TH+TH+2)
                pl.BlockSpec((1, 2, Wp, Cin),
                             lambda n, t: (n, t * (TH // 2) + TH // 2, 0, 0)),
                pl.BlockSpec((9 * Cin, C4), lambda n, t: (0, 0)),
                pl.BlockSpec((1, W * C4), lambda n, t: (0, 0)),
                pl.BlockSpec((1, TH, W * C4), lambda n, t: (n, t, 0)),
            ],
            out_specs=pl.BlockSpec((1, TH, W * C4), lambda n, t: (n, t, 0)),
            scratch_shapes=[
                pltpu.VMEM((TH + 2, Wp, Cin), dtype),          # halo'd window
                pltpu.VMEM((TH * W, 9 * Cin), dtype),          # im2col
                pltpu.VMEM((TH, W * C4), jnp.float32),         # lane-dense acc
            ],
        ),
        compiler_params=pltpu.CompilerParams(
            dimension_semantics=("parallel", "parallel")),
    )(x1_pad, x1_pad, w_packed, b_packed, x2_packed)

    # unpack (n, r, (c, pi, pj, co)) -> NCHW (module contract is NCHW)
    y = out_packed.reshape(N, H, W, 2, 2, Cout)
    y = jnp.transpose(y, (0, 5, 1, 3, 2, 4)).reshape(N, Cout, 2 * H, 2 * W)
    return y


def _reference(x1_nchw, x2_nchw, weight_hwio, bias, scale_factor=2):
    """Pure-JAX reference (mirrors nn.Upsample(nearest) + Conv2d(3,3,pad=1) + add)."""
    x1_up = jnp.repeat(jnp.repeat(x1_nchw, scale_factor, axis=2),
                       scale_factor, axis=3)
    w_oihw = jnp.transpose(weight_hwio, (3, 2, 0, 1))
    y = jax.lax.conv_general_dilated(
        x1_up, w_oihw, window_strides=(1, 1), padding=((1, 1), (1, 1)),
        dimension_numbers=("NCHW", "OIHW", "NCHW"))
    y = y + bias.reshape(1, -1, 1, 1)
    return y + x2_nchw


if __name__ == "__main__":
    key = jax.random.PRNGKey(0)
    k1, k2, k3, k4 = jax.random.split(key, 4)

    N, C, H, W = 2, 4, 16, 16          # num_channels=4, scale_factor=2
    scale = 2
    Cout = C // 2

    x1 = jax.random.normal(k1, (N, C, H, W), dtype=jnp.float32)
    x2 = jax.random.normal(k2, (N, Cout, H * scale, W * scale), dtype=jnp.float32)
    weight = jax.random.normal(k3, (3, 3, C, Cout), dtype=jnp.float32) * 0.1
    bias = jax.random.normal(k4, (Cout,), dtype=jnp.float32) * 0.1

    # tile_h=8 -> grid (N=2, nT=2), exercising the row tiling + 2 parallel axes.
    out = upsample_block(x1, x2, weight, bias, scale_factor=scale, tile_h=8)
    out = jax.block_until_ready(out)

    ref = jax.block_until_ready(_reference(x1, x2, weight, bias, scale_factor=scale))
    np.testing.assert_allclose(np.asarray(out), np.asarray(ref),
                               rtol=1e-5, atol=1e-5)

    print("KERNEL_OK")
</pallas_src>

<mosaic_0001>
module attributes {stable_mosaic.version = 11 : i64} {
  func.func @_upsample_conv_add_kernel(%arg0: i32, %arg1: i32, %arg2: memref<1x8x18x4xf32, #tpu.memory_space<vmem>>, %arg3: memref<1x2x18x4xf32, #tpu.memory_space<vmem>>, %arg4: memref<36x8xf32, #tpu.memory_space<vmem>>, %arg5: memref<1x128xf32, #tpu.memory_space<vmem>>, %arg6: memref<1x8x128xf32, #tpu.memory_space<vmem>>, %arg7: memref<1x8x128xf32, #tpu.memory_space<vmem>>, %arg8: memref<10x18x4xf32, #tpu.memory_space<vmem>>, %arg9: memref<128x36xf32, #tpu.memory_space<vmem>>, %arg10: memref<8x128xf32, #tpu.memory_space<vmem>>) attributes {dimension_semantics = [#tpu.dimension_semantics<parallel>, #tpu.dimension_semantics<parallel>], iteration_bounds = array<i64: 2, 2>, scalar_prefetch = 0 : i64, scratch_operands = 3 : i64, tpu.core_type = #tpu.core_type<tc>, window_params = [{transform_indices = @transform_0, window_bounds = array<i64: 1, 8, 18, 4>}, {transform_indices = @transform_1, window_bounds = array<i64: 1, 2, 18, 4>}, {pipeline_mode = #tpu.pipeline_mode<synchronous>, transform_indices = @transform_2, window_bounds = array<i64: 36, 8>}, {pipeline_mode = #tpu.pipeline_mode<synchronous>, transform_indices = @transform_3, window_bounds = array<i64: 1, 128>}, {transform_indices = @transform_4, window_bounds = array<i64: 1, 8, 128>}, {transform_indices = @transform_5, window_bounds = array<i64: 1, 8, 128>}]} {
    %c0 = arith.constant 0 : index
    %c0_0 = arith.constant 0 : index
    %c0_1 = arith.constant 0 : index
    %c0_2 = arith.constant 0 : index
    %0 = vector.load %arg2[%c0, %c0_0, %c0_1, %c0_2] : memref<1x8x18x4xf32, #tpu.memory_space<vmem>>, vector<1x8x18x4xf32>
    %1 = vector.shape_cast %0 : vector<1x8x18x4xf32> to vector<8x18x4xf32>
    %c0_3 = arith.constant 0 : index
    %c0_4 = arith.constant 0 : index
    %c0_5 = arith.constant 0 : index
    %2 = vector.load %arg8[%c0_3, %c0_4, %c0_5] : memref<10x18x4xf32, #tpu.memory_space<vmem>>, vector<8x18x4xf32>
    tpu.vector_store %arg8[%c0_3, %c0_4, %c0_5], %1 {strides = array<i32>} : memref<10x18x4xf32, #tpu.memory_space<vmem>>, vector<8x18x4xf32>,
    %c0_6 = arith.constant 0 : index
    %c0_7 = arith.constant 0 : index
    %c0_8 = arith.constant 0 : index
    %c0_9 = arith.constant 0 : index
    %3 = vector.load %arg3[%c0_6, %c0_7, %c0_8, %c0_9] : memref<1x2x18x4xf32, #tpu.memory_space<vmem>>, vector<1x2x18x4xf32>
    %4 = vector.shape_cast %3 : vector<1x2x18x4xf32> to vector<2x18x4xf32>
    %c8 = arith.constant 8 : index
    %c0_10 = arith.constant 0 : index
    %c0_11 = arith.constant 0 : index
    %5 = vector.load %arg8[%c8, %c0_10, %c0_11] : memref<10x18x4xf32, #tpu.memory_space<vmem>>, vector<2x18x4xf32>
    tpu.vector_store %arg8[%c8, %c0_10, %c0_11], %4 {strides = array<i32>} : memref<10x18x4xf32, #tpu.memory_space<vmem>>, vector<2x18x4xf32>,
    %c0_12 = arith.constant 0 : index
    %c0_13 = arith.constant 0 : index
    %c0_14 = arith.constant 0 : index
    %6 = vector.load %arg8[%c0_12, %c0_13, %c0_14] : memref<10x18x4xf32, #tpu.memory_space<vmem>>, vector<8x16x4xf32>
    %7 = vector.shape_cast %6 : vector<8x16x4xf32> to vector<128x4xf32>
    %c0_15 = arith.constant 0 : index
    %c0_16 = arith.constant 0 : index
    %8 = vector.load %arg9[%c0_15, %c0_16] : memref<128x36xf32, #tpu.memory_space<vmem>>, vector<128x4xf32>
    tpu.vector_store %arg9[%c0_15, %c0_16], %7 {strides = array<i32>} : memref<128x36xf32, #tpu.memory_space<vmem>>, vector<128x4xf32>,
    %c0_17 = arith.constant 0 : index
    %c1 = arith.constant 1 : index
    %c0_18 = arith.constant 0 : index
    %9 = vector.load %arg8[%c0_17, %c1, %c0_18] : memref<10x18x4xf32, #tpu.memory_space<vmem>>, vector<8x16x4xf32>
    %10 = vector.shape_cast %9 : vector<8x16x4xf32> to vector<128x4xf32>
    %c0_19 = arith.constant 0 : index
    %c4 = arith.constant 4 : index
    %11 = vector.load %arg9[%c0_19, %c4] : memref<128x36xf32, #tpu.memory_space<vmem>>, vector<128x4xf32>
    tpu.vector_store %arg9[%c0_19, %c4], %10 {strides = array<i32>} : memref<128x36xf32, #tpu.memory_space<vmem>>, vector<128x4xf32>,
    %c0_20 = arith.constant 0 : index
    %c2 = arith.constant 2 : index
    %c0_21 = arith.constant 0 : index
    %12 = vector.load %arg8[%c0_20, %c2, %c0_21] : memref<10x18x4xf32, #tpu.memory_space<vmem>>, vector<8x16x4xf32>
    %13 = vector.shape_cast %12 : vector<8x16x4xf32> to vector<128x4xf32>
    %c0_22 = arith.constant 0 : index
    %c8_23 = arith.constant 8 : index
    %14 = vector.load %arg9[%c0_22, %c8_23] : memref<128x36xf32, #tpu.memory_space<vmem>>, vector<128x4xf32>
    tpu.vector_store %arg9[%c0_22, %c8_23], %13 {strides = array<i32>} : memref<128x36xf32, #tpu.memory_space<vmem>>, vector<128x4xf32>,
    %c1_24 = arith.constant 1 : index
    %c0_25 = arith.constant 0 : index
    %c0_26 = arith.constant 0 : index
    %15 = vector.load %arg8[%c1_24, %c0_25, %c0_26] : memref<10x18x4xf32, #tpu.memory_space<vmem>>, vector<8x16x4xf32>
    %16 = vector.shape_cast %15 : vector<8x16x4xf32> to vector<128x4xf32>
    %c0_27 = arith.constant 0 : index
    %c12 = arith.constant 12 : index
    %17 = vector.load %arg9[%c0_27, %c12] : memref<128x36xf32, #tpu.memory_space<vmem>>, vector<128x4xf32>
    tpu.vector_store %arg9[%c0_27, %c12], %16 {strides = array<i32>} : memref<128x36xf32, #tpu.memory_space<vmem>>, vector<128x4xf32>,
    %c1_28 = arith.constant 1 : index
    %c1_29 = arith.constant 1 : index
    %c0_30 = arith.constant 0 : index
    %18 = vector.load %arg8[%c1_28, %c1_29, %c0_30] : memref<10x18x4xf32, #tpu.memory_space<vmem>>, vector<8x16x4xf32>
    %19 = vector.shape_cast %18 : vector<8x16x4xf32> to vector<128x4xf32>
    %c0_31 = arith.constant 0 : index
    %c16 = arith.constant 16 : index
    %20 = vector.load %arg9[%c0_31, %c16] : memref<128x36xf32, #tpu.memory_space<vmem>>, vector<128x4xf32>
    tpu.vector_store %arg9[%c0_31, %c16], %19 {strides = array<i32>} : memref<128x36xf32, #tpu.memory_space<vmem>>, vector<128x4xf32>,
    %c1_32 = arith.constant 1 : index
    %c2_33 = arith.constant 2 : index
    %c0_34 = arith.constant 0 : index
    %21 = vector.load %arg8[%c1_32, %c2_33, %c0_34] : memref<10x18x4xf32, #tpu.memory_space<vmem>>, vector<8x16x4xf32>
    %22 = vector.shape_cast %21 : vector<8x16x4xf32> to vector<128x4xf32>
    %c0_35 = arith.constant 0 : index
    %c20 = arith.constant 20 : index
    %23 = vector.load %arg9[%c0_35, %c20] : memref<128x36xf32, #tpu.memory_space<vmem>>, vector<128x4xf32>
    tpu.vector_store %arg9[%c0_35, %c20], %22 {strides = array<i32>} : memref<128x36xf32, #tpu.memory_space<vmem>>, vector<128x4xf32>,
    %c2_36 = arith.constant 2 : index
    %c0_37 = arith.constant 0 : index
    %c0_38 = arith.constant 0 : index
    %24 = vector.load %arg8[%c2_36, %c0_37, %c0_38] : memref<10x18x4xf32, #tpu.memory_space<vmem>>, vector<8x16x4xf32>
    %25 = vector.shape_cast %24 : vector<8x16x4xf32> to vector<128x4xf32>
    %c0_39 = arith.constant 0 : index
    %c24 = arith.constant 24 : index
    %26 = vector.load %arg9[%c0_39, %c24] : memref<128x36xf32, #tpu.memory_space<vmem>>, vector<128x4xf32>
    tpu.vector_store %arg9[%c0_39, %c24], %25 {strides = array<i32>} : memref<128x36xf32, #tpu.memory_space<vmem>>, vector<128x4xf32>,
    %c2_40 = arith.constant 2 : index
    %c1_41 = arith.constant 1 : index
    %c0_42 = arith.constant 0 : index
    %27 = vector.load %arg8[%c2_40, %c1_41, %c0_42] : memref<10x18x4xf32, #tpu.memory_space<vmem>>, vector<8x16x4xf32>
    %28 = vector.shape_cast %27 : vector<8x16x4xf32> to vector<128x4xf32>
    %c0_43 = arith.constant 0 : index
    %c28 = arith.constant 28 : index
    %29 = vector.load %arg9[%c0_43, %c28] : memref<128x36xf32, #tpu.memory_space<vmem>>, vector<128x4xf32>
    tpu.vector_store %arg9[%c0_43, %c28], %28 {strides = array<i32>} : memref<128x36xf32, #tpu.memory_space<vmem>>, vector<128x4xf32>,
    %c2_44 = arith.constant 2 : index
    %c2_45 = arith.constant 2 : index
    %c0_46 = arith.constant 0 : index
    %30 = vector.load %arg8[%c2_44, %c2_45, %c0_46] : memref<10x18x4xf32, #tpu.memory_space<vmem>>, vector<8x16x4xf32>
    %31 = vector.shape_cast %30 : vector<8x16x4xf32> to vector<128x4xf32>
    %c0_47 = arith.constant 0 : index
    %c32 = arith.constant 32 : index
    %32 = vector.load %arg9[%c0_47, %c32] : memref<128x36xf32, #tpu.memory_space<vmem>>, vector<128x4xf32>
    tpu.vector_store %arg9[%c0_47, %c32], %31 {strides = array<i32>} : memref<128x36xf32, #tpu.memory_space<vmem>>, vector<128x4xf32>,
    %c0_48 = arith.constant 0 : index
    %c0_49 = arith.constant 0 : index
    %33 = vector.load %arg9[%c0_48, %c0_49] : memref<128x36xf32, #tpu.memory_space<vmem>>, vector<128x36xf32>
    %c0_50 = arith.constant 0 : index
    %c0_51 = arith.constant 0 : index
    %34 = vector.load %arg4[%c0_50, %c0_51] : memref<36x8xf32, #tpu.memory_space<vmem>>, vector<36x8xf32>
    %cst = arith.constant dense<0.000000e+00> : vector<128x8xf32>
    %35 = tpu.matmul %33, %34, %cst {dimension_numbers = #tpu.dot_dimension_numbers<[1], [0], [0], [1], [0, 0, 1, 1], [], []>} : vector<128x36xf32>, vector<36x8xf32>, vector<128x8xf32> -> vector<128x8xf32>
    %36 = vector.shape_cast %35 : vector<128x8xf32> to vector<8x16x8xf32>
    %37 = vector.extract_strided_slice %36 {offsets = [0, 0, 0], sizes = [8, 1, 8], strides = [1, 1, 1]} : vector<8x16x8xf32> to vector<8x1x8xf32>
    %38 = vector.shape_cast %37 : vector<8x1x8xf32> to vector<8x8xf32>
    %c0_52 = arith.constant 0 : index
    %c0_53 = arith.constant 0 : index
    %39 = vector.load %arg10[%c0_52, %c0_53] : memref<8x128xf32, #tpu.memory_space<vmem>>, vector<8x8xf32>
    tpu.vector_store %arg10[%c0_52, %c0_53], %38 {strides = array<i32>} : memref<8x128xf32, #tpu.memory_space<vmem>>, vector<8x8xf32>,
    %40 = vector.extract_strided_slice %36 {offsets = [0, 1, 0], sizes = [8, 1, 8], strides = [1, 1, 1]} : vector<8x16x8xf32> to vector<8x1x8xf32>
    %41 = vector.shape_cast %40 : vector<8x1x8xf32> to vector<8x8xf32>
    %c0_54 = arith.constant 0 : index
    %c8_55 = arith.constant 8 : index
    %42 = vector.load %arg10[%c0_54, %c8_55] : memref<8x128xf32, #tpu.memory_space<vmem>>, vector<8x8xf32>
    tpu.vector_store %arg10[%c0_54, %c8_55], %41 {strides = array<i32>} : memref<8x128xf32, #tpu.memory_space<vmem>>, vector<8x8xf32>,
    %43 = vector.extract_strided_slice %36 {offsets = [0, 2, 0], sizes = [8, 1, 8], strides = [1, 1, 1]} : vector<8x16x8xf32> to vector<8x1x8xf32>
    %44 = vector.shape_cast %43 : vector<8x1x8xf32> to vector<8x8xf32>
    %c0_56 = arith.constant 0 : index
    %c16_57 = arith.constant 16 : index
    %45 = vector.load %arg10[%c0_56, %c16_57] : memref<8x128xf32, #tpu.memory_space<vmem>>, vector<8x8xf32>
    tpu.vector_store %arg10[%c0_56, %c16_57], %44 {strides = array<i32>} : memref<8x128xf32, #tpu.memory_space<vmem>>, vector<8x8xf32>,
    %46 = vector.extract_strided_slice %36 {offsets = [0, 3, 0], sizes = [8, 1, 8], strides = [1, 1, 1]} : vector<8x16x8xf32> to vector<8x1x8xf32>
    %47 = vector.shape_cast %46 : vector<8x1x8xf32> to vector<8x8xf32>
    %c0_58 = arith.constant 0 : index
    %c24_59 = arith.constant 24 : index
    %48 = vector.load %arg10[%c0_58, %c24_59] : memref<8x128xf32, #tpu.memory_space<vmem>>, vector<8x8xf32>
    tpu.vector_store %arg10[%c0_58, %c24_59], %47 {strides = array<i32>} : memref<8x128xf32, #tpu.memory_space<vmem>>, vector<8x8xf32>,
    %49 = vector.extract_strided_slice %36 {offsets = [0, 4, 0], sizes = [8, 1, 8], strides = [1, 1, 1]} : vector<8x16x8xf32> to vector<8x1x8xf32>
    %50 = vector.shape_cast %49 : vector<8x1x8xf32> to vector<8x8xf32>
    %c0_60 = arith.constant 0 : index
    %c32_61 = arith.constant 32 : index
    %51 = vector.load %arg10[%c0_60, %c32_61] : memref<8x128xf32, #tpu.memory_space<vmem>>, vector<8x8xf32>
    tpu.vector_store %arg10[%c0_60, %c32_61], %50 {strides = array<i32>} : memref<8x128xf32, #tpu.memory_space<vmem>>, vector<8x8xf32>,
    %52 = vector.extract_strided_slice %36 {offsets = [0, 5, 0], sizes = [8, 1, 8], strides = [1, 1, 1]} : vector<8x16x8xf32> to vector<8x1x8xf32>
    %53 = vector.shape_cast %52 : vector<8x1x8xf32> to vector<8x8xf32>
    %c0_62 = arith.constant 0 : index
    %c40 = arith.constant 40 : index
    %54 = vector.load %arg10[%c0_62, %c40] : memref<8x128xf32, #tpu.memory_space<vmem>>, vector<8x8xf32>
    tpu.vector_store %arg10[%c0_62, %c40], %53 {strides = array<i32>} : memref<8x128xf32, #tpu.memory_space<vmem>>, vector<8x8xf32>,
    %55 = vector.extract_strided_slice %36 {offsets = [0, 6, 0], sizes = [8, 1, 8], strides = [1, 1, 1]} : vector<8x16x8xf32> to vector<8x1x8xf32>
    %56 = vector.shape_cast %55 : vector<8x1x8xf32> to vector<8x8xf32>
    %c0_63 = arith.constant 0 : index
    %c48 = arith.constant 48 : index
    %57 = vector.load %arg10[%c0_63, %c48] : memref<8x128xf32, #tpu.memory_space<vmem>>, vector<8x8xf32>
    tpu.vector_store %arg10[%c0_63, %c48], %56 {strides = array<i32>} : memref<8x128xf32, #tpu.memory_space<vmem>>, vector<8x8xf32>,
    %58 = vector.extract_strided_slice %36 {offsets = [0, 7, 0], sizes = [8, 1, 8], strides = [1, 1, 1]} : vector<8x16x8xf32> to vector<8x1x8xf32>
    %59 = vector.shape_cast %58 : vector<8x1x8xf32> to vector<8x8xf32>
    %c0_64 = arith.constant 0 : index
    %c56 = arith.constant 56 : index
    %60 = vector.load %arg10[%c0_64, %c56] : memref<8x128xf32, #tpu.memory_space<vmem>>, vector<8x8xf32>
    tpu.vector_store %arg10[%c0_64, %c56], %59 {strides = array<i32>} : memref<8x128xf32, #tpu.memory_space<vmem>>, vector<8x8xf32>,
    %61 = vector.extract_strided_slice %36 {offsets = [0, 8, 0], sizes = [8, 1, 8], strides = [1, 1, 1]} : vector<8x16x8xf32> to vector<8x1x8xf32>
    %62 = vector.shape_cast %61 : vector<8x1x8xf32> to vector<8x8xf32>
    %c0_65 = arith.constant 0 : index
    %c64 = arith.constant 64 : index
    %63 = vector.load %arg10[%c0_65, %c64] : memref<8x128xf32, #tpu.memory_space<vmem>>, vector<8x8xf32>
    tpu.vector_store %arg10[%c0_65, %c64], %62 {strides = array<i32>} : memref<8x128xf32, #tpu.memory_space<vmem>>, vector<8x8xf32>,
    %64 = vector.extract_strided_slice %36 {offsets = [0, 9, 0], sizes = [8, 1, 8], strides = [1, 1, 1]} : vector<8x16x8xf32> to vector<8x1x8xf32>
    %65 = vector.shape_cast %64 : vector<8x1x8xf32> to vector<8x8xf32>
    %c0_66 = arith.constant 0 : index
    %c72 = arith.constant 72 : index
    %66 = vector.load %arg10[%c0_66, %c72] : memref<8x128xf32, #tpu.memory_space<vmem>>, vector<8x8xf32>
    tpu.vector_store %arg10[%c0_66, %c72], %65 {strides = array<i32>} : memref<8x128xf32, #tpu.memory_space<vmem>>, vector<8x8xf32>,
    %67 = vector.extract_strided_slice %36 {offsets = [0, 10, 0], sizes = [8, 1, 8], strides = [1, 1, 1]} : vector<8x16x8xf32> to vector<8x1x8xf32>
    %68 = vector.shape_cast %67 : vector<8x1x8xf32> to vector<8x8xf32>
    %c0_67 = arith.constant 0 : index
    %c80 = arith.constant 80 : index
    %69 = vector.load %arg10[%c0_67, %c80] : memref<8x128xf32, #tpu.memory_space<vmem>>, vector<8x8xf32>
    tpu.vector_store %arg10[%c0_67, %c80], %68 {strides = array<i32>} : memref<8x128xf32, #tpu.memory_space<vmem>>, vector<8x8xf32>,
    %70 = vector.extract_strided_slice %36 {offsets = [0, 11, 0], sizes = [8, 1, 8], strides = [1, 1, 1]} : vector<8x16x8xf32> to vector<8x1x8xf32>
    %71 = vector.shape_cast %70 : vector<8x1x8xf32> to vector<8x8xf32>
    %c0_68 = arith.constant 0 : index
    %c88 = arith.constant 88 : index
    %72 = vector.load %arg10[%c0_68, %c88] : memref<8x128xf32, #tpu.memory_space<vmem>>, vector<8x8xf32>
    tpu.vector_store %arg10[%c0_68, %c88], %71 {strides = array<i32>} : memref<8x128xf32, #tpu.memory_space<vmem>>, vector<8x8xf32>,
    %73 = vector.extract_strided_slice %36 {offsets = [0, 12, 0], sizes = [8, 1, 8], strides = [1, 1, 1]} : vector<8x16x8xf32> to vector<8x1x8xf32>
    %74 = vector.shape_cast %73 : vector<8x1x8xf32> to vector<8x8xf32>
    %c0_69 = arith.constant 0 : index
    %c96 = arith.constant 96 : index
    %75 = vector.load %arg10[%c0_69, %c96] : memref<8x128xf32, #tpu.memory_space<vmem>>, vector<8x8xf32>
    tpu.vector_store %arg10[%c0_69, %c96], %74 {strides = array<i32>} : memref<8x128xf32, #tpu.memory_space<vmem>>, vector<8x8xf32>,
    %76 = vector.extract_strided_slice %36 {offsets = [0, 13, 0], sizes = [8, 1, 8], strides = [1, 1, 1]} : vector<8x16x8xf32> to vector<8x1x8xf32>
    %77 = vector.shape_cast %76 : vector<8x1x8xf32> to vector<8x8xf32>
    %c0_70 = arith.constant 0 : index
    %c104 = arith.constant 104 : index
    %78 = vector.load %arg10[%c0_70, %c104] : memref<8x128xf32, #tpu.memory_space<vmem>>, vector<8x8xf32>
    tpu.vector_store %arg10[%c0_70, %c104], %77 {strides = array<i32>} : memref<8x128xf32, #tpu.memory_space<vmem>>, vector<8x8xf32>,
    %79 = vector.extract_strided_slice %36 {offsets = [0, 14, 0], sizes = [8, 1, 8], strides = [1, 1, 1]} : vector<8x16x8xf32> to vector<8x1x8xf32>
    %80 = vector.shape_cast %79 : vector<8x1x8xf32> to vector<8x8xf32>
    %c0_71 = arith.constant 0 : index
    %c112 = arith.constant 112 : index
    %81 = vector.load %arg10[%c0_71, %c112] : memref<8x128xf32, #tpu.memory_space<vmem>>, vector<8x8xf32>
    tpu.vector_store %arg10[%c0_71, %c112], %80 {strides = array<i32>} : memref<8x128xf32, #tpu.memory_space<vmem>>, vector<8x8xf32>,
    %82 = vector.extract_strided_slice %36 {offsets = [0, 15, 0], sizes = [8, 1, 8], strides = [1, 1, 1]} : vector<8x16x8xf32> to vector<8x1x8xf32>
    %83 = vector.shape_cast %82 : vector<8x1x8xf32> to vector<8x8xf32>
    %c0_72 = arith.constant 0 : index
    %c120 = arith.constant 120 : index
    %84 = vector.load %arg10[%c0_72, %c120] : memref<8x128xf32, #tpu.memory_space<vmem>>, vector<8x8xf32>
    tpu.vector_store %arg10[%c0_72, %c120], %83 {strides = array<i32>} : memref<8x128xf32, #tpu.memory_space<vmem>>, vector<8x8xf32>,
    %c0_73 = arith.constant 0 : index
    %c0_74 = arith.constant 0 : index
    %85 = vector.load %arg10[%c0_73, %c0_74] : memref<8x128xf32, #tpu.memory_space<vmem>>, vector<8x128xf32>
    %c0_75 = arith.constant 0 : index
    %c0_76 = arith.constant 0 : index
    %86 = vector.load %arg5[%c0_75, %c0_76] : memref<1x128xf32, #tpu.memory_space<vmem>>, vector<1x128xf32>
    %87 = vector.broadcast %86 : vector<1x128xf32> to vector<8x128xf32>
    %88 = arith.addf %85, %87 : vector<8x128xf32>
    %c0_77 = arith.constant 0 : index
    %c0_78 = arith.constant 0 : index
    %c0_79 = arith.constant 0 : index
    %89 = vector.load %arg6[%c0_77, %c0_78, %c0_79] : memref<1x8x128xf32, #tpu.memory_space<vmem>>, vector<1x8x128xf32>
    %90 = vector.shape_cast %89 : vector<1x8x128xf32> to vector<8x128xf32>
    %91 = arith.addf %88, %90 : vector<8x128xf32>
    %c0_80 = arith.constant 0 : index
    %c0_81 = arith.constant 0 : index
    %c0_82 = arith.constant 0 : index
    %92 = vector.load %arg7[%c0_80, %c0_81, %c0_82] : memref<1x8x128xf32, #tpu.memory_space<vmem>>, vector<1x8x128xf32>
    %93 = vector.shape_cast %92 : vector<1x8x128xf32> to vector<8x128xf32>
    %94 = vector.shape_cast %91 : vector<8x128xf32> to vector<1x8x128xf32>
    tpu.vector_store %arg7[%c0_80, %c0_81, %c0_82], %94 {strides = array<i32>} : memref<1x8x128xf32, #tpu.memory_space<vmem>>, vector<1x8x128xf32>,
    return
  }
  func.func @transform_0(%arg0: i32, %arg1: i32) -> (i32, i32, i32, i32) {
    %c0_i32 = arith.constant 0 : i32
    %c0_i32_0 = arith.constant 0 : i32
    %c0_i32_1 = arith.constant 0 : i32
    return %arg0, %arg1, %c0_i32, %c0_i32_0 : i32, i32, i32, i32
  }
  func.func @transform_1(%arg0: i32, %arg1: i32) -> (i32, i32, i32, i32) {
    %c4_i32 = arith.constant 4 : i32
    %0 = arith.muli %arg1, %c4_i32 : i32
    %c4_i32_0 = arith.constant 4 : i32
    %1 = arith.addi %0, %c4_i32_0 : i32
    %c0_i32 = arith.constant 0 : i32
    %c0_i32_1 = arith.constant 0 : i32
    %c0_i32_2 = arith.constant 0 : i32
    return %arg0, %1, %c0_i32, %c0_i32_1 : i32, i32, i32, i32
  }
  func.func @transform_2(%arg0: i32, %arg1: i32) -> (i32, i32) {
    %c0_i32 = arith.constant 0 : i32
    %c0_i32_0 = arith.constant 0 : i32
    %c0_i32_1 = arith.constant 0 : i32
    return %c0_i32, %c0_i32_0 : i32, i32
  }
  func.func @transform_3(%arg0: i32, %arg1: i32) -> (i32, i32) {
    %c0_i32 = arith.constant 0 : i32
    %c0_i32_0 = arith.constant 0 : i32
    %c0_i32_1 = arith.constant 0 : i32
    return %c0_i32, %c0_i32_0 : i32, i32
  }
  func.func @transform_4(%arg0: i32, %arg1: i32) -> (i32, i32, i32) {
    %c0_i32 = arith.constant 0 : i32
    %c0_i32_0 = arith.constant 0 : i32
    return %arg0, %arg1, %c0_i32 : i32, i32, i32
  }
  func.func @transform_5(%arg0: i32, %arg1: i32) -> (i32, i32, i32) {
    %c0_i32 = arith.constant 0 : i32
    %c0_i32_0 = arith.constant 0 : i32
    return %arg0, %arg1, %c0_i32 : i32, i32, i32
  }
}

</mosaic_0001>

<bundles_post_ra>
// kernel: tpu_custom_call.1
= control target key start
LH: loop header
LB: loop body
LE: loop exit
PB: predicated region body
PF: predicated region fallthrough
CT: control target
= control target key end

     0   :  { %s3087_s0 = inlined_call_operand.vmem [shape: f32[2,18,18,4], index: 0, kind: input, shape index: {}]   ;;  %s3088_s1 = inlined_call_operand.vmem [shape: f32[2,18,18,4], index: 1, kind: input, shape index: {}]   ;;  %s3089_s2 = inlined_call_operand.vmem [shape: f32[36,8], index: 2, kind: input, shape index: {}]   ;;  %s3090_s3 = inlined_call_operand.vmem [shape: f32[1,128], index: 3, kind: input, shape index: {}]   ;;  %s3091_s4 = inlined_call_operand.vmem [shape: f32[2,16,128], index: 4, kind: input, shape index: {}]   ;;  %s3092_s5 = inlined_call_operand.hbm [shape: f32[2,16,128], index: 5, kind: output, shape index: {}]  }
   0x1   :  { %3107 = sst [smem:[#allocation8_spill]] %s3087_s0 }
   0x2   :  { %3108 = sst [smem:[#allocation9_spill]] %s3088_s1 }
   0x3   :  { %3109 = sst [smem:[#allocation10_spill]] %s3089_s2 }
   0x4   :  { %10 = vsyncpa [#allocation6], 0 }
   0x5   :  { %12 = vsyncpa [#allocation6 + $0x1], 0  ;;  %s2237_s18 = smov 0   ;;  %s2239_s19 = smov 0  }
   0x6   :  { %s2241_s20 = smov 0   ;;  %s2243_s21 = smov 0  }
   0x7   :  { %s2245_s22 = smov 0   ;;  %s2247_s23 = smov 0  }
   0x8   :  { %s2249_s24 = smov 0   ;;  %s2251_s25 = smov 0  }
   0x9 LB: > { %s1888_s26 = sadd.s32 4294967295, %s2185_s25   ;;  %s1889_s27 = sadd.s32 4294967294, %s2185_s25   ;;  %s2185_s25 = sphi %s2251_s25, %s18_s25   ;;  %s2181_s24 = sphi %s2249_s24, %s3129_s24   ;;  %s2177_s23 = sphi %s2247_s23, %s3128_s23   ;;  %s2173_s22 = sphi %s2245_s22, %s3127_s22   ;;  %s2169_s21 = sphi %s2243_s21, %s3126_s21   ;;  %s2165_s20 = sphi %s2241_s20, %s3125_s20   ;;  %s2161_s19 = sphi %s2239_s19, %s3124_s19   ;;  %s2157_s18 = sphi %s2237_s18, %s3123_s18  }
   0xa   : > { %s27_s28 = sadd.s32 1, %s2177_s23  ;;  %s30_s29 = sadd.s32 1, %s2181_s24 }
   0xb   : > { %p28_p0 = scmp.ge.s32.totalorder %s27_s28, 2  ;;  %p179_p1 = scmp.ne.s32.totalorder %s2165_s20, %s2161_s19 }
   0xc   : > { %p180_p2 = scmp.eq.s32.totalorder %s1888_s26, 3  ;;  %p185_p5 = scmp.ne.s32.totalorder %s2161_s19, %s2157_s18 }
   0xd   : > { %s3131_s28 = smov (%p28_p0, %s27_s28), 0  ;;  %s3133_s29 = smov (!%p28_p0, %s30_s29), %s2181_s24 }
   0xe   : > { %s165_s30 = ssub.s32 %s2177_s23, %s3131_s28  ;;  %p2288_p3 = por %p180_p2, %p179_p1 }
   0xf   : > { %p32_p4 = scmp.ge.s32.totalorder %s3133_s29, 2  ;;  %p186_p6 = scmp.eq.s32.totalorder %s1889_s27, 3 }
  0x10   : > { %p1894_p7 = scmp.ge.s32.totalorder %s2185_s25, 1  ;;  %p263_p9 = scmp.lt.s32.totalorder %s2185_s25, 5 }
  0x11   : > { %s3135_s29 = smov (%p32_p4, %s3133_s29), 0  ;;  %p2297_p8 = por %p186_p6, %p185_p5 }
  0x12   : > { %s164_s8 = ssub.s32 %s2181_s24, %s3135_s29  ;;  %s169_s9 = sadd.s32 1, %s2165_s20 }
  0x13   : > { %s166_s10 = sor.u32 %s165_s30, %s164_s8  ;;  %p264_p10 = pnand %p1894_p7, %p263_p9 }
  0x14   : > { %p167_p11 = scmp.eq.s32.totalorder %s166_s10, 0  ;;  %s2309_s12 = sshll.u32 (!%p264_p10), %s2169_s21, 3  ;;  %vm389_vm0 = vcmask (!%p264_p10), 31744   ;;  %vm392_vm1 = vcmask (!%p264_p10), 25600   ;;  %vm1308_vm2 = vcmask (!%p264_p10), 1043456   ;;  %vm540_vm3 = vcmask (!%p264_p10), 64544  }
  0x15   : > { %267 = sbr.rel (%p264_p10) target bundleno = 834 (0x342), region = 40  ;;  %p327_p12 = scmp.lt.s32.totalorder (!%p264_p10), %s2173_s22, 1  ;;  %vm637_vm4 = vcmask (!%p264_p10), 97344   ;;  %vm735_vm5 = vcmask (!%p264_p10), 130144   ;;  %vm832_vm6 = vcmask (!%p264_p10), 162944   ;;  %vm929_vm7 = vcmask (!%p264_p10), 195744  }
  0x16   : > { %s2306_s11 = scalar_select %p167_p11, %s2165_s20, %s169_s9  }
  0x17   : > { %p329_p13 = scmp.lt.s32.totalorder (!%p264_p10), %s2309_s12, 17  ;;  %s3112_s0 = sld [smem:[#allocation8_spill]] (!%p264_p10)  ;;  %vm1027_vm8 = vcmask (!%p264_p10), 228544   ;;  %vm1124_vm9 = vcmask (!%p264_p10), 261344   ;;  %vm1221_vm10 = vcmask (!%p264_p10), 294144   ;;  %vm1259_vm11 = vcmask (!%p264_p10), 293888  }
  0x18   : > { %s3095_s9 = smov (!%p264_p10), 8   ;;  %s3102_s10 = smov (!%p264_p10), 4   ;;  %vm1481_vm12 = vcmask (!%p264_p10), 1046534   ;;  %vm1478_vm13 = vcmask (!%p264_p10), 1045509   ;;  %vm1472_vm14 = vcmask (!%p264_p10), 1043459   ;;  %vm1475_vm15 = vcmask (!%p264_p10), 1044484  }
  0x19   : > { %s3100_s27 = smov (!%p264_p10), 28   ;;  %s3113_s2 = sld [smem:[#allocation10_spill]] (!%p264_p10) }
  0x1a   : > { %s3115_s1 = sld [smem:[#allocation9_spill]] (!%p264_p10)  ;;  %p359_p1 = scmp.lt.s32.totalorder (!%p264_p10), %s2169_s21, 1 }
  0x1c   : > { %s2314_s13 = scalar_select %p327_p12, %s2173_s22, 1 }
  0x1d   : > { %s330_s14 = scalar_select %p329_p13, %s2309_s12, 17 }
  0x1e   : > { %s3099_s15 = smul.u32 54, %s2314_s13 }
  0x1f   : > { %s1998_s16 = smul.u32 3, %s330_s14  ;;  %s3097_s14 = smov 12   ;;  %v1254_v55 = vld [vmem:[%s3113_s2] sm:$0xff]  ;;  %v1255_v56 = vld [vmem:[%s3113_s2 + $0x8] sm:$0xff]  ;;  %v1256_v59 = vld [vmem:[%s3113_s2 + $0x10] sm:$0xff] }
  0x20   : > { %v1984_v57 = vpack.c.bf16 %v1255_v56, %v1254_v55  ;;  %v1257_v60 = vld [vmem:[%s3113_s2 + $0x18] sm:$0xff]  ;;  %v1258_v62 = vld [vmem:[%s3113_s2 + $0x20] sm:$0xf] }
  0x21   : > { %s333_s17 = sadd.s32 %s3099_s15, %s1998_s16  ;;  %s3104_s16 = smov 16   ;;  %v1988_v61 = vpack.c.bf16 %v1257_v60, %v1256_v59 }
  0x22   : > { %s1897_s26 = sshll.u32 %s333_s17, 3  ;;  %s2191_s17 = smov 20   ;;  %1985 = vmatprep.subr.bf16.mxu0 %v1984_v57  ;;  %1992 = vmatprep.subr.bf16.mxu1 %v1984_v57 }
  0x23   : > { %s2323_s8 = scalar_lea.vmem %s3112_s0, %s1897_s26  ;;  %s3093_s26 = smov 24   ;;  %1987 = vmatpush3.bf16.msra.mxu0 %v1984_v57  ;;  %1995 = vmatpush3.bf16.msra.mxu1 %v1984_v57 }
  0x24   : > { %v365_v0 = vld [vmem:[%s2323_s8] sm:$0xff]  ;;  %v366_v1 = vld [vmem:[%s2323_s8 + $0x8] sm:$0xff]  ;;  %v367_v2 = vld [vmem:[%s2323_s8 + $0x10] sm:$0x3]  ;;  %1989 = vmatprep.subr.bf16.mxu0 %v1988_v61  ;;  %1993 = vmatprep.subr.bf16.mxu1 %v1988_v61 }
  0x25   : > { %390 = vst.msk [vmem:[#allocation2] sm:$0xff] %vm389_vm0, %v365_v0  ;;  %391 = vst.msk [vmem:[#allocation2 + $0x8] sm:$0xff] %vm389_vm0, %v366_v1  ;;  %v369_v3 = vld [vmem:[%s2323_s8 + $0x20] sm:$0xff]  ;;  %v368_v4 = vld [vmem:[%s2323_s8 + $0x18] sm:$0xff] }
  0x26   : > { %393 = vst.msk [vmem:[#allocation2 + $0x10] sm:$0x3] %vm392_vm1, %v367_v2  ;;  %v370_v5 = vld [vmem:[%s2323_s8 + $0x28] sm:$0x3]  ;;  %v377_v6 = vld [vmem:[%s2323_s8 + $0x60] sm:$0xff]  ;;  %v371_v9 = vld [vmem:[%s2323_s8 + $0x30] sm:$0xff] }
  0x27   : > { %395 = vst.msk [vmem:[#allocation2 + $0x20] sm:$0xff] %vm389_vm0, %v369_v3  ;;  %394 = vst.msk [vmem:[#allocation2 + $0x18] sm:$0xff] %vm389_vm0, %v368_v4  ;;  %v378_v7 = vld [vmem:[%s2323_s8 + $0x68] sm:$0xff]  ;;  %v379_v8 = vld [vmem:[%s2323_s8 + $0x70] sm:$0x3]  ;;  %1991 = vmatpush3.bf16.msra.mxu0 %v1988_v61  ;;  %1996 = vmatpush3.bf16.msra.mxu1 %v1988_v61 }
  0x28   : > { %396 = vst.msk [vmem:[#allocation2 + $0x28] sm:$0x3] %vm392_vm1, %v370_v5  ;;  %405 = vst.msk [vmem:[#allocation2 + $0x70] sm:$0x3] %vm392_vm1, %v379_v8  ;;  %v372_v10 = vld [vmem:[%s2323_s8 + $0x38] sm:$0xff]  ;;  %v381_v12 = vld [vmem:[%s2323_s8 + $0x80] sm:$0xff]  ;;  %1958 = vmatprep.subr.msk.mxu0 %vm1308_vm2, %v1258_v62  ;;  %1994 = vmatprep.subr.msk.mxu1 %vm1308_vm2, %v1258_v62 }
  0x29   : > { %403 = vst.msk [vmem:[#allocation2 + $0x60] sm:$0xff] %vm389_vm0, %v377_v6  ;;  %404 = vst.msk [vmem:[#allocation2 + $0x68] sm:$0xff] %vm389_vm0, %v378_v7  ;;  %v380_v11 = vld [vmem:[%s2323_s8 + $0x78] sm:$0xff]  ;;  %v373_v13 = vld [vmem:[%s2323_s8 + $0x40] sm:$0x3] }
  0x2a   : > { %397 = vst.msk [vmem:[#allocation2 + $0x30] sm:$0xff] %vm389_vm0, %v371_v9  ;;  %398 = vst.msk [vmem:[#allocation2 + $0x38] sm:$0xff] %vm389_vm0, %v372_v10  ;;  %v382_v14 = vld [vmem:[%s2323_s8 + $0x88] sm:$0x3]  ;;  %v383_v15 = vld [vmem:[%s2323_s8 + $0x90] sm:$0xff] }
  0x2b   : > { %406 = vst.msk [vmem:[#allocation2 + $0x78] sm:$0xff] %vm389_vm0, %v380_v11  ;;  %407 = vst.msk [vmem:[#allocation2 + $0x80] sm:$0xff] %vm389_vm0, %v381_v12  ;;  %v374_v16 = vld [vmem:[%s2323_s8 + $0x48] sm:$0xff]  ;;  %v384_v17 = vld [vmem:[%s2323_s8 + $0x98] sm:$0xff]  ;;  %1959 = vmatpush3.msk.msra.mxu0 %vm1308_vm2, %v1258_v62  ;;  %1997 = vmatpush3.msk.msra.mxu1 %vm1308_vm2, %v1258_v62  ;;  %vm1469_vm2 = vcmask 1042434  }
  0x2c   : > { %399 = vst.msk [vmem:[#allocation2 + $0x40] sm:$0x3] %vm392_vm1, %v373_v13  ;;  %408 = vst.msk [vmem:[#allocation2 + $0x88] sm:$0x3] %vm392_vm1, %v382_v14  ;;  %v375_v18 = vld [vmem:[%s2323_s8 + $0x50] sm:$0xff]  ;;  %v557_v21 = vld [vmem:[#allocation2 + $0x2] sm:$0xff] }
  0x2d   : > { %409 = vst.msk [vmem:[#allocation2 + $0x90] sm:$0xff] %vm389_vm0, %v383_v15  ;;  %400 = vst.msk [vmem:[#allocation2 + $0x48] sm:$0xff] %vm389_vm0, %v374_v16  ;;  %v385_v19 = vld [vmem:[%s2323_s8 + $0xa0] sm:$0x3]  ;;  %v376_v20 = vld [vmem:[%s2323_s8 + $0x58] sm:$0x3]  ;;  %589 = vrot.lane.b32.xlu1 %v557_v21, %s3095_s9 }
  0x2e   : > { %410 = vst.msk [vmem:[#allocation2 + $0x98] sm:$0xff] %vm389_vm0, %v384_v17  ;;  %401 = vst.msk [vmem:[#allocation2 + $0x50] sm:$0xff] %vm389_vm0, %v375_v18  ;;  %v460_v22 = vld [vmem:[#allocation2 + $0x1] sm:$0xff]  ;;  %v655_v24 = vld [vmem:[#allocation2 + $0x18] sm:$0xff] }
  0x2f   : > { %411 = vst.msk [vmem:[#allocation2 + $0xa0] sm:$0x3] %vm392_vm1, %v385_v19  ;;  %402 = vst.msk [vmem:[#allocation2 + $0x58] sm:$0x3] %vm392_vm1, %v376_v20  ;;  %492 = vrot.lane.b32.xlu0 %v460_v22, %s3102_s10  ;;  %v656_v23 = vld [vmem:[#allocation2 + $0x20] sm:$0xff]  ;;  %v558_v25 = vld [vmem:[#allocation2 + $0xa] sm:$0xff] }
  0x30   : > { %v461_v26 = vld [vmem:[#allocation2 + $0x9] sm:$0xff]  ;;  %446 = vst.msk [vmem:[#allocation3 + $0x10] sm:$0xff] %vm389_vm0, %v655_v24  ;;  %447 = vst.msk [vmem:[#allocation3 + $0x18] sm:$0xff] %vm389_vm0, %v656_v23  ;;  %v462_v35 = vld [vmem:[#allocation2 + $0x19] sm:$0xff] }
  0x31   : > { %v947_v27 = vld [vmem:[#allocation2 + $0x30] sm:$0xff]  ;;  %591 = vrot.lane.b32.xlu1 %v558_v25, %s3095_s9  ;;  %v2373_v28 = vld [vmem:[#allocation2 + $0x38] sm:$0xff]  ;;  %v428_v36 = vld [vmem:[#allocation2] sm:$0xff] }
  0x32   : > { %v2375_v29 = vld [vmem:[#allocation2 + $0x78] sm:$0xff]  ;;  %448 = vst.msk [vmem:[#allocation3 + $0x20] sm:$0xff] %vm389_vm0, %v947_v27  ;;  %v2378_v30 = vld [vmem:[#allocation2 + $0x80] sm:$0xff]  ;;  %449 = vst.msk [vmem:[#allocation3 + $0x28] sm:$0xff] %vm389_vm0, %v2373_v28 }
  0x33   : > { %494 = vrot.lane.b32.xlu0 %v461_v26, %s3102_s10  ;;  %454 = vst.msk [vmem:[#allocation3 + $0x50] sm:$0xff] %vm389_vm0, %v2375_v29  ;;  %455 = vst.msk [vmem:[#allocation3 + $0x58] sm:$0xff] %vm389_vm0, %v2378_v30  ;;  %v429_v37 = vld [vmem:[#allocation2 + $0x8] sm:$0xff]  ;;  %v2405_v38 = vld [vmem:[#allocation2 + $0x60] sm:$0xff] }
  0x34   : > { %v2386_v31 = vld [vmem:[#allocation2 + $0x90] sm:$0xff]  ;;  %v2390_v32 = vld [vmem:[#allocation2 + $0x48] sm:$0xff]  ;;  %444 = vst.msk [vmem:[#allocation3] sm:$0xff] %vm389_vm0, %v428_v36  ;;  %445 = vst.msk [vmem:[#allocation3 + $0x8] sm:$0xff] %vm389_vm0, %v429_v37 }
  0x35   : > { %689 = vrot.lane.b32.xlu1 %v656_v23, %s3097_s14  ;;  %v2392_v33 = vld [vmem:[#allocation2 + $0x98] sm:$0xff]  ;;  %v2394_v34 = vld [vmem:[#allocation2 + $0x50] sm:$0xff]  ;;  %456 = vst.msk [vmem:[#allocation3 + $0x60] sm:$0xff] %vm389_vm0, %v2386_v31  ;;  %450 = vst.msk [vmem:[#allocation3 + $0x30] sm:$0xff] %vm389_vm0, %v2390_v32 }
  0x36   : > { %457 = vst.msk [vmem:[#allocation3 + $0x68] sm:$0xff] %vm389_vm0, %v2392_v33  ;;  %451 = vst.msk [vmem:[#allocation3 + $0x38] sm:$0xff] %vm389_vm0, %v2394_v34  ;;  %v2412_v39 = vld [vmem:[#allocation2 + $0x68] sm:$0xff]  ;;  %v849_v43 = vld [vmem:[#allocation2 + $0x1a] sm:$0xff] }
  0x37   : > { %687 = vrot.lane.b32.xlu0 %v655_v24, %s3097_s14  ;;  %452 = vst.msk [vmem:[#allocation3 + $0x40] sm:$0xff] %vm389_vm0, %v2405_v38  ;;  %v753_v40 = vld [vmem:[#allocation2 + $0x21] sm:$0xff]  ;;  %453 = vst.msk [vmem:[#allocation3 + $0x48] sm:$0xff] %vm389_vm0, %v2412_v39  ;;  %v2425_v44 = vld [vmem:[#allocation2 + $0x69] sm:$0xff] }
  0x38   : > { %v2414_v41 = vld [vmem:[#allocation2 + $0x61] sm:$0xff]  ;;  %v387_v46 = vld [vmem:[%s2323_s8 + $0xb0] sm:$0xff]  ;;  %v388_v51 = vld [vmem:[%s2323_s8 + $0xb8] sm:$0x3] }
  0x39   : > { %496 = vrot.lane.b32.xlu1 %v462_v35, %s3102_s10  ;;  %v386_v42 = vld [vmem:[%s2323_s8 + $0xa8] sm:$0xff]  ;;  %413 = vst.msk [vmem:[#allocation2 + $0xb0] sm:$0xff] %vm389_vm0, %v387_v46  ;;  %v1044_v52 = vld [vmem:[#allocation2 + $0x31] sm:$0xff]  ;;  %v1045_v53 = vld [vmem:[#allocation2 + $0x39] sm:$0xff] }
  0x3a   : > { %412 = vst.msk [vmem:[#allocation2 + $0xa8] sm:$0xff] %vm389_vm0, %v386_v42  ;;  %v850_v47 = vld [vmem:[#allocation2 + $0x22] sm:$0xff]  ;;  %v2447_v50 = vld [vmem:[#allocation2 + $0x6a] sm:$0xff]  ;;  %v2464_v54 = vld [vmem:[#allocation2 + $0x79] sm:$0xff] }
  0x3b   : > { %784 = vrot.lane.b32.xlu0 %v462_v35, %s3104_s16  ;;  %v2436_v48 = vld [vmem:[#allocation2 + $0x62] sm:$0xff]  ;;  %414 = vst.msk [vmem:[#allocation2 + $0xb8] sm:$0x3] %vm392_vm1, %v388_v51  ;;  %v1141_v58 = vld [vmem:[#allocation2 + $0x32] sm:$0xff]  ;;  %v1142_v0 = vld [vmem:[#allocation2 + $0x3a] sm:$0xff] }
  0x3c   : > { %v2489_v63 = vld [vmem:[#allocation2 + $0x81] sm:$0xff]  ;;  %v1052_v6 = vld [vmem:[#allocation2 + $0x91] sm:$0xff]  ;;  %v1046_v7 = vld [vmem:[#allocation2 + $0x49] sm:$0xff] }
  0x3d   : > { %786 = vrot.lane.b32.xlu1 %v753_v40, %s3104_s16  ;;  %v2495_v1 = vld [vmem:[#allocation2 + $0x7a] sm:$0xff]  ;;  %v2515_v3 = vld [vmem:[#allocation2 + $0x82] sm:$0xff]  ;;  %v1047_v11 = vld [vmem:[#allocation2 + $0x51] sm:$0xff] }
  0x3e   : > { %v1053_v10 = vld [vmem:[#allocation2 + $0x99] sm:$0xff]  ;;  %v1143_v14 = vld [vmem:[#allocation2 + $0x4a] sm:$0xff] }
  0x3f   : > { %508 = vrot.lane.b32.xlu0 %v2414_v41, %s3102_s10  ;;  %v1149_v13 = vld [vmem:[#allocation2 + $0x92] sm:$0xff]  ;;  %v1150_v23 = vld [vmem:[#allocation2 + $0x9a] sm:$0xff] }
  0x40   : > { %v2441_v49 = vld [vmem:[#allocation2 + $0xb0] sm:$0xff] }
  0x41   : > { %498 = vrot.lane.b32.xlu1 %v753_v40, %s3102_s10  ;;  %v2427_v45 = vld [vmem:[#allocation2 + $0xa8] sm:$0xff]  ;;  %459 = vst.msk [vmem:[#allocation3 + $0x78] sm:$0xff] %vm389_vm0, %v2441_v49  ;;  %v1144_v24 = vld [vmem:[#allocation2 + $0x52] sm:$0xff] }
  0x42   : > { %458 = vst.msk [vmem:[#allocation3 + $0x70] sm:$0xff] %vm389_vm0, %v2427_v45  ;;  %v1054_v51 = vld [vmem:[#allocation2 + $0xa9] sm:$0xff]  ;;  %v1055_v57 = vld [vmem:[#allocation2 + $0xb1] sm:$0xff] }
  0x43   : > { %881 = vrot.lane.b32.xlu0 %v849_v43, %s2191_s17 }
  0x45   : > { %593 = vrot.lane.b32.xlu1 %v849_v43, %s3095_s9 }
  0x47   : > { %510 = vrot.lane.b32.xlu0 %v2425_v44, %s3102_s10 }
  0x49   : > { %883 = vrot.lane.b32.xlu1 %v850_v47, %s2191_s17 }
  0x4b   : > { %605 = vrot.lane.b32.xlu0 %v2436_v48, %s3095_s9 }
  0x4d   : > { %595 = vrot.lane.b32.xlu1 %v850_v47, %s3095_s9 }
  0x4f   : > { %979 = vrot.lane.b32.xlu0 %v947_v27, %s3093_s26 }
  0x51   : > { %691 = vrot.lane.b32.xlu1 %v947_v27, %s3097_s14 }
  0x53   : > { %607 = vrot.lane.b32.xlu0 %v2447_v50, %s3095_s9  ;;  %s2194_s9 = smov 32  }
  0x55   : > { %981 = vrot.lane.b32.xlu1 %v2373_v28, %s3093_s26  ;;  %s1927_s26 = sadd.s32 8, %s2309_s12  ;;  %s3114_s12 = smul.u32 54, %s2314_s13 }
  0x56   : > { %p347_p0 = scmp.lt.s32.totalorder %s1927_s26, 17 }
  0x57   : > { %703 = vrot.lane.b32.xlu0 %v2375_v29, %s3097_s14 }
  0x58   : > { %s3137_s26 = smov (!%p347_p0, %s1927_s26), 17 }
  0x59   : > { %693 = vrot.lane.b32.xlu1 %v2373_v28, %s3097_s14  ;;  %s2000_s30 = smul.u32 3, %s3137_s26  ;;  %s3117_s26 = smov 8  }
  0x5b   : > { %1076 = vrot.lane.b32.xlu0 %v1044_v52, %s3100_s27  ;;  %s351_s8 = sadd.s32 %s2000_s30, %s3114_s12  ;;  %s3119_s30 = smov 12  }
  0x5c   : > { %s1900_s15 = sshll.u32 %s351_s8, 3  ;;  %s3120_s12 = smov 28  }
  0x5d   : > { %788 = vrot.lane.b32.xlu1 %v1044_v52, %s3104_s16  ;;  %s3121_s8 = smov 16  }
  0x5f   : > { %705 = vrot.lane.b32.xlu0 %v2378_v30, %s3097_s14  ;;  %s2199_s14 = smov 72  }
  0x61   : > { %1078 = vrot.lane.b32.xlu1 %v1045_v53, %s3100_s27  ;;  %s3118_s27 = smov 24  }
  0x63   : > { %800 = vrot.lane.b32.xlu0 %v2464_v54, %s3104_s16 }
  0x65   : > { %500 = vrot.lane.b32.xlu1 %v1044_v52, %s3102_s10 }
  0x67   : > { %1173 = vrot.lane.b32.xlu0 %v1141_v58, %s2194_s9 }
  0x69   : > { %790 = vrot.lane.b32.xlu1 %v1045_v53, %s3104_s16 }
  0x6b   : > { %512 = vrot.lane.b32.xlu0 %v2464_v54, %s3102_s10  ;;  %s2505_s10 = scalar_lea.vmem %s3115_s1, %s1900_s15  ;;  %s2198_s15 = smov 40  }
  0x6c   : > { %v415_v2 = vld [vmem:[%s2505_s10] sm:$0xff]  ;;  %v416_v4 = vld [vmem:[%s2505_s10 + $0x8] sm:$0xff]  ;;  %v417_v5 = vld [vmem:[%s2505_s10 + $0x10] sm:$0x3] }
  0x6d   : > { %885 = vrot.lane.b32.xlu1 %v1141_v58, %s2191_s17  ;;  %422 = vst.msk [vmem:[#allocation2 + $0xc0] sm:$0xff] %vm389_vm0, %v415_v2  ;;  %423 = vst.msk [vmem:[#allocation2 + $0xc8] sm:$0xff] %vm389_vm0, %v416_v4  ;;  %v418_v8 = vld [vmem:[%s2505_s10 + $0x18] sm:$0xff]  ;;  %v419_v9 = vld [vmem:[%s2505_s10 + $0x20] sm:$0xff] }
  0x6e   : > { %424 = vst.msk [vmem:[#allocation2 + $0xd0] sm:$0x3] %vm392_vm1, %v417_v5  ;;  %v420_v12 = vld [vmem:[%s2505_s10 + $0x28] sm:$0x3]  ;;  %s3106_s10 = smov 56  }
  0x6f   : > { %802 = vrot.lane.b32.xlu0 %v2489_v63, %s3104_s16  ;;  %s3116_s16 = smov 4   ;;  %425 = vst.msk [vmem:[#allocation2 + $0xd8] sm:$0xff] %vm389_vm0, %v418_v8  ;;  %426 = vst.msk [vmem:[#allocation2 + $0xe0] sm:$0xff] %vm389_vm0, %v419_v9  ;;  %vm1484_vm0 = vcmask 1047559  }
  0x70   : > { %427 = vst.msk [vmem:[#allocation2 + $0xe8] sm:$0x3] %vm392_vm1, %v420_v12  ;;  %vm1466_vm1 = vcmask 1041409  }
  0x71   : > { %1175 = vrot.lane.b32.xlu1 %v1142_v0, %s2194_s9 }
  0x73   : > { %897 = vrot.lane.b32.xlu0 %v2495_v1, %s2191_s17 }
  0x74   : > { %v959_v12 = vld [vmem:[#allocation2 + $0xc0] sm:$0xff] }
  0x75   : > { %514 = vrot.lane.b32.xlu1 %v2489_v63, %s3116_s16 }
  0x77   : > { %502 = vrot.lane.b32.xlu0 %v1045_v53, %s3116_s16 }
  0x79   : > { %609 = vrot.lane.b32.xlu1 %v2495_v1, %s3117_s26 }
  0x7b   : > { %597 = vrot.lane.b32.xlu0 %v1141_v58, %s3117_s26 }
  0x7d   : > { %899 = vrot.lane.b32.xlu1 %v2515_v3, %s2191_s17 }
  0x7f   : > { %887 = vrot.lane.b32.xlu0 %v1142_v0, %s2191_s17 }
  0x81   : > { %995 = vrot.lane.b32.xlu1 %v2386_v31, %s3118_s27 }
  0x83   : > { %983 = vrot.lane.b32.xlu0 %v2390_v32, %s3118_s27 }
  0x85   : > { %611 = vrot.lane.b32.xlu1 %v2515_v3, %s3117_s26 }
  0x87   : > { %599 = vrot.lane.b32.xlu0 %v1142_v0, %s3117_s26 }
  0x89   : > { %707 = vrot.lane.b32.xlu1 %v2386_v31, %s3119_s30 }
  0x8b   : > { %695 = vrot.lane.b32.xlu0 %v2390_v32, %s3119_s30 }
  0x8d   : > { %997 = vrot.lane.b32.xlu1 %v2392_v33, %s3118_s27 }
  0x8f   : > { %985 = vrot.lane.b32.xlu0 %v2394_v34, %s3118_s27 }
  0x91   : > { %1092 = vrot.lane.b32.xlu1 %v1052_v6, %s3120_s12 }
  0x93   : > { %1080 = vrot.lane.b32.xlu0 %v1046_v7, %s3120_s12 }
  0x95   : > { %709 = vrot.lane.b32.xlu1 %v2392_v33, %s3119_s30 }
  0x97   : > { %697 = vrot.lane.b32.xlu0 %v2394_v34, %s3119_s30 }
  0x99   : > { %804 = vrot.lane.b32.xlu1 %v1052_v6, %s3121_s8 }
  0x9b   : > { %792 = vrot.lane.b32.xlu0 %v1046_v7, %s3121_s8 }
  0x9d   : > { %1094 = vrot.lane.b32.xlu1 %v1053_v10, %s3120_s12 }
  0x9f   : > { %1082 = vrot.lane.b32.xlu0 %v1047_v11, %s3120_s12  ;;  %v590_v15 = vpop.permute.xlu1 %589 }
  0xa1   : > { %v493_v16 = vpop.permute.xlu0 %492  ;;  %1189 = vrot.lane.b32.xlu1 %v1149_v13, %s2194_s9 }
  0xa2   : > { %541 = vst.msk [vmem:[#allocation3] sm:$0xff] %vm540_vm3, %v493_v16 }
  0xa3   : > { %1177 = vrot.lane.b32.xlu0 %v1143_v14, %s2194_s9  ;;  %638 = vst.msk [vmem:[#allocation3] sm:$0xff] %vm637_vm4, %v590_v15  ;;  %v592_v17 = vpop.permute.xlu1 %591 }
  0xa5   : > { %v495_v18 = vpop.permute.xlu0 %494  ;;  %516 = vrot.lane.b32.xlu1 %v1052_v6, %s3116_s16 }
  0xa6   : > { %542 = vst.msk [vmem:[#allocation3 + $0x8] sm:$0xff] %vm540_vm3, %v495_v18  ;;  %v1056_v18 = vld [vmem:[#allocation2 + $0xc1] sm:$0xff] }
  0xa7   : > { %504 = vrot.lane.b32.xlu0 %v1046_v7, %s3116_s16  ;;  %639 = vst.msk [vmem:[#allocation3 + $0x8] sm:$0xff] %vm637_vm4, %v592_v17  ;;  %v690_v19 = vpop.permute.xlu1 %689 }
  0xa8   : > { %737 = vst.msk [vmem:[#allocation3 + $0x8] sm:$0xff] %vm735_vm5, %v690_v19 }
  0xa9   : > { %v688_v20 = vpop.permute.xlu0 %687  ;;  %806 = vrot.lane.b32.xlu1 %v1053_v10, %s3121_s8 }
  0xaa   : > { %736 = vst.msk [vmem:[#allocation3] sm:$0xff] %vm735_vm5, %v688_v20 }
  0xab   : > { %794 = vrot.lane.b32.xlu0 %v1047_v11, %s3121_s8  ;;  %v497_v21 = vpop.permute.xlu1 %496 }
  0xac   : > { %543 = vst.msk [vmem:[#allocation3 + $0x10] sm:$0xff] %vm540_vm3, %v497_v21 }
  0xad   : > { %v785_v22 = vpop.permute.xlu0 %784  ;;  %901 = vrot.lane.b32.xlu1 %v1149_v13, %s2191_s17 }
  0xae   : > { %833 = vst.msk [vmem:[#allocation3] sm:$0xff] %vm832_vm6, %v785_v22 }
  0xaf   : > { %889 = vrot.lane.b32.xlu0 %v1143_v14, %s2191_s17  ;;  %v787_v25 = vpop.permute.xlu1 %786 }
  0xb0   : > { %834 = vst.msk [vmem:[#allocation3 + $0x8] sm:$0xff] %vm832_vm6, %v787_v25 }
  0xb1   : > { %v509_v26 = vpop.permute.xlu0 %508  ;;  %1191 = vrot.lane.b32.xlu1 %v1150_v23, %s2194_s9 }
  0xb2   : > { %549 = vst.msk [vmem:[#allocation3 + $0x40] sm:$0xff] %vm540_vm3, %v509_v26 }
  0xb3   : > { %1179 = vrot.lane.b32.xlu0 %v1144_v24, %s2194_s9  ;;  %v499_v27 = vpop.permute.xlu1 %498 }
  0xb4   : > { %544 = vst.msk [vmem:[#allocation3 + $0x18] sm:$0xff] %vm540_vm3, %v499_v27 }
  0xb5   : > { %v882_v28 = vpop.permute.xlu0 %881  ;;  %518 = vrot.lane.b32.xlu1 %v1053_v10, %s3116_s16 }
  0xb6   : > { %930 = vst.msk [vmem:[#allocation3] sm:$0xff] %vm929_vm7, %v882_v28 }
  0xb7   : > { %506 = vrot.lane.b32.xlu0 %v1047_v11, %s3116_s16  ;;  %v594_v31 = vpop.permute.xlu1 %593 }
  0xb8   : > { %640 = vst.msk [vmem:[#allocation3 + $0x10] sm:$0xff] %vm637_vm4, %v594_v31 }
  0xb9   : > { %v511_v32 = vpop.permute.xlu0 %510  ;;  %613 = vrot.lane.b32.xlu1 %v1149_v13, %s3117_s26 }
  0xba   : > { %550 = vst.msk [vmem:[#allocation3 + $0x48] sm:$0xff] %vm540_vm3, %v511_v32 }
  0xbb   : > { %601 = vrot.lane.b32.xlu0 %v1143_v14, %s3117_s26  ;;  %v884_v33 = vpop.permute.xlu1 %883 }
  0xbc   : > { %931 = vst.msk [vmem:[#allocation3 + $0x8] sm:$0xff] %vm929_vm7, %v884_v33 }
  0xbd   : > { %v606_v34 = vpop.permute.xlu0 %605  ;;  %903 = vrot.lane.b32.xlu1 %v1150_v23, %s2191_s17 }
  0xbe   : > { %646 = vst.msk [vmem:[#allocation3 + $0x40] sm:$0xff] %vm637_vm4, %v606_v34  ;;  %v962_v34 = vld [vmem:[#allocation2 + $0xe0] sm:$0xff] }
  0xbf   : > { %891 = vrot.lane.b32.xlu0 %v1144_v24, %s2191_s17  ;;  %v596_v35 = vpop.permute.xlu1 %595 }
  0xc0   : > { %641 = vst.msk [vmem:[#allocation3 + $0x18] sm:$0xff] %vm637_vm4, %v596_v35 }
  0xc1   : > { %v980_v36 = vpop.permute.xlu0 %979  ;;  %999 = vrot.lane.b32.xlu1 %v2427_v45, %s3118_s27 }
  0xc2   : > { %1028 = vst.msk [vmem:[#allocation3] sm:$0xff] %vm1027_vm8, %v980_v36 }
  0xc3   : > { %987 = vrot.lane.b32.xlu0 %v2405_v38, %s3118_s27  ;;  %v692_v37 = vpop.permute.xlu1 %691 }
  0xc4   : > { %738 = vst.msk [vmem:[#allocation3 + $0x10] sm:$0xff] %vm735_vm5, %v692_v37  ;;  %v1058_v37 = vld [vmem:[#allocation2 + $0xd9] sm:$0xff] }
  0xc5   : > { %v608_v40 = vpop.permute.xlu0 %607  ;;  %615 = vrot.lane.b32.xlu1 %v1150_v23, %s3117_s26 }
  0xc6   : > { %647 = vst.msk [vmem:[#allocation3 + $0x48] sm:$0xff] %vm637_vm4, %v608_v40  ;;  %v1059_v40 = vld [vmem:[#allocation2 + $0xe1] sm:$0xff] }
  0xc7   : > { %603 = vrot.lane.b32.xlu0 %v1144_v24, %s3117_s26  ;;  %v982_v42 = vpop.permute.xlu1 %981  ;;  %v1153_v24 = vld [vmem:[#allocation2 + $0xc2] sm:$0xff] }
  0xc8   : > { %1029 = vst.msk [vmem:[#allocation3 + $0x8] sm:$0xff] %vm1027_vm8, %v982_v42 }
  0xc9   : > { %v704_v43 = vpop.permute.xlu0 %703  ;;  %711 = vrot.lane.b32.xlu1 %v2427_v45, %s3119_s30 }
  0xca   : > { %744 = vst.msk [vmem:[#allocation3 + $0x40] sm:$0xff] %vm735_vm5, %v704_v43 }
  0xcb   : > { %699 = vrot.lane.b32.xlu0 %v2405_v38, %s3119_s30  ;;  %v694_v46 = vpop.permute.xlu1 %693 }
  0xcc   : > { %739 = vst.msk [vmem:[#allocation3 + $0x18] sm:$0xff] %vm735_vm5, %v694_v46  ;;  %v1155_v46 = vld [vmem:[#allocation2 + $0xda] sm:$0xff] }
  0xcd   : > { %v1077_v47 = vpop.permute.xlu0 %1076  ;;  %1001 = vrot.lane.b32.xlu1 %v2441_v49, %s3118_s27 }
  0xce   : > { %1125 = vst.msk [vmem:[#allocation3] sm:$0xff] %vm1124_vm9, %v1077_v47  ;;  %v1156_v47 = vld [vmem:[#allocation2 + $0xe2] sm:$0xff] }
  0xcf   : > { %989 = vrot.lane.b32.xlu0 %v2412_v39, %s3118_s27  ;;  %v789_v52 = vpop.permute.xlu1 %788 }
  0xd0   : > { %835 = vst.msk [vmem:[#allocation3 + $0x10] sm:$0xff] %vm832_vm6, %v789_v52 }
  0xd1   : > { %v706_v53 = vpop.permute.xlu0 %705  ;;  %1096 = vrot.lane.b32.xlu1 %v1054_v51, %s3120_s12 }
  0xd2   : > { %745 = vst.msk [vmem:[#allocation3 + $0x48] sm:$0xff] %vm735_vm5, %v706_v53 }
  0xd3   : > { %1084 = vrot.lane.b32.xlu0 %v2414_v41, %s3120_s12  ;;  %v1079_v38 = vpop.permute.xlu1 %1078 }
  0xd4   : > { %1126 = vst.msk [vmem:[#allocation3 + $0x8] sm:$0xff] %vm1124_vm9, %v1079_v38 }
  0xd5   : > { %v801_v45 = vpop.permute.xlu0 %800  ;;  %713 = vrot.lane.b32.xlu1 %v2441_v49, %s3119_s30 }
  0xd6   : > { %841 = vst.msk [vmem:[#allocation3 + $0x40] sm:$0xff] %vm832_vm6, %v801_v45 }
  0xd7   : > { %701 = vrot.lane.b32.xlu0 %v2412_v39, %s3119_s30  ;;  %v501_v55 = vpop.permute.xlu1 %500  ;;  %v1151_v39 = vld [vmem:[#allocation2 + $0xaa] sm:$0xff] }
  0xd8   : > { %545 = vst.msk [vmem:[#allocation3 + $0x20] sm:$0xff] %vm540_vm3, %v501_v55 }
  0xd9   : > { %v1174_v56 = vpop.permute.xlu0 %1173  ;;  %808 = vrot.lane.b32.xlu1 %v1054_v51, %s3121_s8 }
  0xda   : > { %1222 = vst.msk [vmem:[#allocation3] sm:$0xff] %vm1221_vm10, %v1174_v56 }
  0xdb   : > { %796 = vrot.lane.b32.xlu0 %v2414_v41, %s3121_s8  ;;  %v791_v58 = vpop.permute.xlu1 %790 }
  0xdc   : > { %836 = vst.msk [vmem:[#allocation3 + $0x18] sm:$0xff] %vm832_vm6, %v791_v58 }
  0xdd   : > { %v513_v59 = vpop.permute.xlu0 %512  ;;  %1098 = vrot.lane.b32.xlu1 %v1055_v57, %s3120_s12 }
  0xde   : > { %551 = vst.msk [vmem:[#allocation3 + $0x50] sm:$0xff] %vm540_vm3, %v513_v59 }
  0xdf   : > { %1086 = vrot.lane.b32.xlu0 %v2425_v44, %s3120_s12  ;;  %v886_v49 = vpop.permute.xlu1 %885 }
  0xe0   : > { %932 = vst.msk [vmem:[#allocation3 + $0x10] sm:$0xff] %vm929_vm7, %v886_v49 }
  0xe1   : > { %v803_v60 = vpop.permute.xlu0 %802  ;;  %v1238_v61 = vld [vmem:[#allocation3] sm:$0xff]  ;;  %1193 = vrot.lane.b32.xlu1 %v1151_v39, %s2194_s9 }
  0xe2   : > { %842 = vst.msk [vmem:[#allocation3 + $0x48] sm:$0xff] %vm832_vm6, %v803_v60  ;;  %1960 = vmatprep.mubr.msk.f32.mxu0 %vm1259_vm11, %v1238_v61 }
  0xe3   : > { %1181 = vrot.lane.b32.xlu0 %v2436_v48, %s2194_s9  ;;  %v1176_v41 = vpop.permute.xlu1 %1175 }
  0xe4   : > { %1223 = vst.msk [vmem:[#allocation3 + $0x8] sm:$0xff] %vm1221_vm10, %v1176_v41 }
  0xe5   : > { %v898_v62 = vpop.permute.xlu0 %897  ;;  %798 = vrot.lane.b32.xlu1 %v2425_v44, %s3121_s8  ;;  %v1152_v44 = vld [vmem:[#allocation2 + $0xb2] sm:$0xff] }
  0xe6   : > { %938 = vst.msk [vmem:[#allocation3 + $0x40] sm:$0xff] %vm929_vm7, %v898_v62 }
  0xe7   : > { %520 = vrot.lane.b32.xlu0 %v1054_v51, %s3116_s16  ;;  %v515_v0 = vpop.permute.xlu1 %514 }
  0xe8   : > { %552 = vst.msk [vmem:[#allocation3 + $0x58] sm:$0xff] %vm540_vm3, %v515_v0 }
  0xe9   : > { %v503_v2 = vpop.permute.xlu0 %502  ;;  %893 = vrot.lane.b32.xlu1 %v2436_v48, %s2191_s17 }
  0xea   : > { %546 = vst.msk [vmem:[#allocation3 + $0x28] sm:$0xff] %vm540_vm3, %v503_v2 }
  0xeb   : > { %810 = vrot.lane.b32.xlu0 %v1055_v57, %s3121_s8  ;;  %v610_v4 = vpop.permute.xlu1 %609  ;;  %v1239_v6 = vld [vmem:[#allocation3 + $0x8] sm:$0xff] }
  0xec   : > { %648 = vst.msk [vmem:[#allocation3 + $0x50] sm:$0xff] %vm637_vm4, %v610_v4  ;;  %1961 = vmatmul.mubr.msk.f32.vlgmr.msra.gmra.mrb[0].mxu0 %vm1259_vm11, %v1239_v6 }
  0xed   : > { %v598_v5 = vpop.permute.xlu0 %597  ;;  %1183 = vrot.lane.b32.xlu1 %v2447_v50, %s2194_s9 }
  0xee   : > { %642 = vst.msk [vmem:[#allocation3 + $0x20] sm:$0xff] %vm637_vm4, %v598_v5 }
  0xef   : > { %905 = vrot.lane.b32.xlu0 %v1151_v39, %s2191_s17  ;;  %v900_v7 = vpop.permute.xlu1 %899 }
  0xf0   : > { %939 = vst.msk [vmem:[#allocation3 + $0x48] sm:$0xff] %vm929_vm7, %v900_v7 }
  0xf1   : > { %v888_v8 = vpop.permute.xlu0 %887  ;;  %522 = vrot.lane.b32.xlu1 %v1055_v57, %s3116_s16  ;;  %s2196_s16 = smov 48  }
  0xf2   : > { %933 = vst.msk [vmem:[#allocation3 + $0x18] sm:$0xff] %vm929_vm7, %v888_v8 }
  0xf3   : > { %1195 = vrot.lane.b32.xlu0 %v1152_v44, %s2194_s9  ;;  %v996_v48 = vpop.permute.xlu1 %995 }
  0xf4   : > { %1036 = vst.msk [vmem:[#allocation3 + $0x40] sm:$0xff] %vm1027_vm8, %v996_v48 }
  0xf5   : > { %v984_v9 = vpop.permute.xlu0 %983  ;;  %895 = vrot.lane.b32.xlu1 %v2447_v50, %s2191_s17 }
  0xf6   : > { %1030 = vst.msk [vmem:[#allocation3 + $0x10] sm:$0xff] %vm1027_vm8, %v984_v9 }
  0xf7   : > { %617 = vrot.lane.b32.xlu0 %v1151_v39, %s3117_s26  ;;  %v612_v10 = vpop.permute.xlu1 %611 }
  0xf8   : > { %649 = vst.msk [vmem:[#allocation3 + $0x58] sm:$0xff] %vm637_vm4, %v612_v10 }
  0xf9   : > { %v600_v11 = vpop.permute.xlu0 %599  ;;  %991 = vrot.lane.b32.xlu1 %v2375_v29, %s3118_s27  ;;  %v960_v29 = vld [vmem:[#allocation2 + $0xc8] sm:$0xff] }
  0xfa   : > { %643 = vst.msk [vmem:[#allocation3 + $0x28] sm:$0xff] %vm637_vm4, %v600_v11 }
  0xfb   : > { %907 = vrot.lane.b32.xlu0 %v1152_v44, %s2191_s17  ;;  %v708_v13 = vpop.permute.xlu1 %707 }
  0xfc   : > { %746 = vst.msk [vmem:[#allocation3 + $0x50] sm:$0xff] %vm735_vm5, %v708_v13 }
  0xfd   : > { %v696_v14 = vpop.permute.xlu0 %695  ;;  %619 = vrot.lane.b32.xlu1 %v1152_v44, %s3117_s26 }
  0xfe   : > { %740 = vst.msk [vmem:[#allocation3 + $0x20] sm:$0xff] %vm735_vm5, %v696_v14 }
  0xff   : > { %1003 = vrot.lane.b32.xlu0 %v959_v12, %s3118_s27  ;;  %v998_v50 = vpop.permute.xlu1 %997 }
 0x100   : > { %1037 = vst.msk [vmem:[#allocation3 + $0x48] sm:$0xff] %vm1027_vm8, %v998_v50 }
 0x101   : > { %v986_v15 = vpop.permute.xlu0 %985  ;;  %993 = vrot.lane.b32.xlu1 %v2378_v30, %s3118_s27 }
 0x102   : > { %1031 = vst.msk [vmem:[#allocation3 + $0x18] sm:$0xff] %vm1027_vm8, %v986_v15 }
 0x103   : > { %715 = vrot.lane.b32.xlu0 %v959_v12, %s3119_s30  ;;  %v1093_v16 = vpop.permute.xlu1 %1092 }
 0x104   : > { %1133 = vst.msk [vmem:[#allocation3 + $0x40] sm:$0xff] %vm1124_vm9, %v1093_v16 }
 0x105   : > { %v1081_v17 = vpop.permute.xlu0 %1080  ;;  %1088 = vrot.lane.b32.xlu1 %v2464_v54, %s3120_s12  ;;  %v1057_v54 = vld [vmem:[#allocation2 + $0xc9] sm:$0xff] }
 0x106   : > { %1127 = vst.msk [vmem:[#allocation3 + $0x10] sm:$0xff] %vm1124_vm9, %v1081_v17 }
 0x107   : > { %1005 = vrot.lane.b32.xlu0 %v960_v29, %s3118_s27  ;;  %v710_v19 = vpop.permute.xlu1 %709 }
 0x108   : > { %747 = vst.msk [vmem:[#allocation3 + $0x58] sm:$0xff] %vm735_vm5, %v710_v19 }
 0x109   : > { %v698_v20 = vpop.permute.xlu0 %697  ;;  %717 = vrot.lane.b32.xlu1 %v960_v29, %s3119_s30  ;;  %s2200_s30 = smov 80  }
 0x10a   : > { %741 = vst.msk [vmem:[#allocation3 + $0x28] sm:$0xff] %vm735_vm5, %v698_v20 }
 0x10b   : > { %1100 = vrot.lane.b32.xlu0 %v1056_v18, %s3120_s12  ;;  %v805_v30 = vpop.permute.xlu1 %804 }
 0x10c   : > { %843 = vst.msk [vmem:[#allocation3 + $0x50] sm:$0xff] %vm832_vm6, %v805_v30 }
 0x10d   : > { %v793_v21 = vpop.permute.xlu0 %792  ;;  %1090 = vrot.lane.b32.xlu1 %v2489_v63, %s3120_s12 }
 0x10e   : > { %837 = vst.msk [vmem:[#allocation3 + $0x20] sm:$0xff] %vm832_vm6, %v793_v21 }
 0x10f   : > { %812 = vrot.lane.b32.xlu0 %v1056_v18, %s3121_s8  ;;  %v1095_v22 = vpop.permute.xlu1 %1094 }
 0x110   : > { %1134 = vst.msk [vmem:[#allocation3 + $0x48] sm:$0xff] %vm1124_vm9, %v1095_v22 }
 0x111   : > { %v1083_v23 = vpop.permute.xlu0 %1082  ;;  %1185 = vrot.lane.b32.xlu1 %v2495_v1, %s2194_s9  ;;  %v1154_v1 = vld [vmem:[#allocation2 + $0xca] sm:$0xff] }
 0x112   : > { %1128 = vst.msk [vmem:[#allocation3 + $0x18] sm:$0xff] %vm1124_vm9, %v1083_v23 }
 0x113   : > { %1102 = vrot.lane.b32.xlu0 %v1057_v54, %s3120_s12  ;;  %v1190_v25 = vpop.permute.xlu1 %1189 }
 0x114   : > { %1230 = vst.msk [vmem:[#allocation3 + $0x40] sm:$0xff] %vm1221_vm10, %v1190_v25 }
 0x115   : > { %v1178_v26 = vpop.permute.xlu0 %1177  ;;  %814 = vrot.lane.b32.xlu1 %v1057_v54, %s3121_s8 }
 0x116   : > { %1224 = vst.msk [vmem:[#allocation3 + $0x10] sm:$0xff] %vm1221_vm10, %v1178_v26 }
 0x117   : > { %1197 = vrot.lane.b32.xlu0 %v1153_v24, %s2194_s9  ;;  %v517_v63 = vpop.permute.xlu1 %516 }
 0x118   : > { %553 = vst.msk [vmem:[#allocation3 + $0x60] sm:$0xff] %vm540_vm3, %v517_v63 }
 0x119   : > { %v505_v27 = vpop.permute.xlu0 %504  ;;  %1187 = vrot.lane.b32.xlu1 %v2515_v3, %s2194_s9  ;;  %v961_v3 = vld [vmem:[#allocation2 + $0xd8] sm:$0xff] }
 0x11a   : > { %547 = vst.msk [vmem:[#allocation3 + $0x30] sm:$0xff] %vm540_vm3, %v505_v27 }
 0x11b   : > { %909 = vrot.lane.b32.xlu0 %v1153_v24, %s2191_s17  ;;  %v807_v28 = vpop.permute.xlu1 %806  ;;  %v1246_v33 = vld [vmem:[#allocation3 + $0x40] sm:$0xff] }
 0x11c   : > { %844 = vst.msk [vmem:[#allocation3 + $0x58] sm:$0xff] %vm832_vm6, %v807_v28  ;;  %1972 = vmatprep.mubr.msk.f32.mxu1 %vm1259_vm11, %v1246_v33 }
 0x11d   : > { %v795_v31 = vpop.permute.xlu0 %794  ;;  %v1240_v32 = vld [vmem:[#allocation3 + $0x10] sm:$0xff]  ;;  %911 = vrot.lane.b32.xlu1 %v1154_v1, %s2191_s17  ;;  %s2197_s17 = smov 104  }
 0x11e   : > { %838 = vst.msk [vmem:[#allocation3 + $0x28] sm:$0xff] %vm832_vm6, %v795_v31  ;;  %1963 = vmatprep.mubr.msk.f32.mxu0 %vm1259_vm11, %v1240_v32 }
 0x11f   : > { %1199 = vrot.lane.b32.xlu0 %v1154_v1, %s2194_s9  ;;  %v902_v35 = vpop.permute.xlu1 %901 }
 0x120   : > { %940 = vst.msk [vmem:[#allocation3 + $0x50] sm:$0xff] %vm929_vm7, %v902_v35 }
 0x121   : > { %v890_v36 = vpop.permute.xlu0 %889  ;;  %1009 = vrot.lane.b32.xlu1 %v962_v34, %s3118_s27 }
 0x122   : > { %934 = vst.msk [vmem:[#allocation3 + $0x20] sm:$0xff] %vm929_vm7, %v890_v36 }
 0x123   : > { %1007 = vrot.lane.b32.xlu0 %v961_v3, %s3118_s27  ;;  %v1192_v42 = vpop.permute.xlu1 %1191 }
 0x124   : > { %1231 = vst.msk [vmem:[#allocation3 + $0x48] sm:$0xff] %vm1221_vm10, %v1192_v42 }
 0x125   : > { %v1180_v43 = vpop.permute.xlu0 %1179  ;;  %1106 = vrot.lane.b32.xlu1 %v1059_v40, %s3120_s12 }
 0x126   : > { %1225 = vst.msk [vmem:[#allocation3 + $0x18] sm:$0xff] %vm1221_vm10, %v1180_v43 }
 0x127   : > { %1104 = vrot.lane.b32.xlu0 %v1058_v37, %s3120_s12  ;;  %v519_v51 = vpop.permute.xlu1 %518  ;;  %s2201_s12 = smov 96  }
 0x128   : > { %554 = vst.msk [vmem:[#allocation3 + $0x68] sm:$0xff] %vm540_vm3, %v519_v51 }
 0x129   : > { %v507_v52 = vpop.permute.xlu0 %506  ;;  %1203 = vrot.lane.b32.xlu1 %v1156_v47, %s2194_s9 }
 0x12a   : > { %548 = vst.msk [vmem:[#allocation3 + $0x38] sm:$0xff] %vm540_vm3, %v507_v52 }
 0x12b   : > { %1201 = vrot.lane.b32.xlu0 %v1155_v46, %s2194_s9  ;;  %v614_v53 = vpop.permute.xlu1 %613  ;;  %v1247_v55 = vld [vmem:[#allocation3 + $0x48] sm:$0xff] }
 0x12c   : > { %650 = vst.msk [vmem:[#allocation3 + $0x60] sm:$0xff] %vm637_vm4, %v614_v53  ;;  %1973 = vmatmul.mubr.msk.f32.vlgmr.msra.gmra.mrb[0].mxu1 %vm1259_vm11, %v1247_v55 }
 0x12d   : > { %v602_v38 = vpop.permute.xlu0 %601  ;;  %v1241_v45 = vld [vmem:[#allocation3 + $0x18] sm:$0xff] }
 0x12e   : > { %644 = vst.msk [vmem:[#allocation3 + $0x30] sm:$0xff] %vm637_vm4, %v602_v38  ;;  %1964 = vmatmul.mubr.msk.f32.gmra.mrb[2].mxu0 %vm1259_vm11, %v1241_v45 }
 0x12f   : > { %v904_v56 = vpop.permute.xlu1 %903 }
 0x130   : > { %941 = vst.msk [vmem:[#allocation3 + $0x58] sm:$0xff] %vm929_vm7, %v904_v56 }
 0x131   : > { %v892_v57 = vpop.permute.xlu0 %891 }
 0x132   : > { %935 = vst.msk [vmem:[#allocation3 + $0x28] sm:$0xff] %vm929_vm7, %v892_v57 }
 0x133   : > { %v1000_v58 = vpop.permute.xlu1 %999 }
 0x134   : > { %1038 = vst.msk [vmem:[#allocation3 + $0x50] sm:$0xff] %vm1027_vm8, %v1000_v58 }
 0x135   : > { %v988_v59 = vpop.permute.xlu0 %987 }
 0x136   : > { %1032 = vst.msk [vmem:[#allocation3 + $0x20] sm:$0xff] %vm1027_vm8, %v988_v59 }
 0x137   : > { %v616_v39 = vpop.permute.xlu1 %615 }
 0x138   : > { %651 = vst.msk [vmem:[#allocation3 + $0x68] sm:$0xff] %vm637_vm4, %v616_v39 }
 0x139   : > { %v604_v49 = vpop.permute.xlu0 %603 }
 0x13a   : > { %645 = vst.msk [vmem:[#allocation3 + $0x38] sm:$0xff] %vm637_vm4, %v604_v49 }
 0x13b   : > { %v712_v60 = vpop.permute.xlu1 %711 }
 0x13c   : > { %748 = vst.msk [vmem:[#allocation3 + $0x60] sm:$0xff] %vm735_vm5, %v712_v60 }
 0x13d   : > { %v700_v61 = vpop.permute.xlu0 %699 }
 0x13e   : > { %742 = vst.msk [vmem:[#allocation3 + $0x30] sm:$0xff] %vm735_vm5, %v700_v61 }
 0x13f   : > { %v1002_v41 = vpop.permute.xlu1 %1001 }
 0x140   : > { %1039 = vst.msk [vmem:[#allocation3 + $0x58] sm:$0xff] %vm1027_vm8, %v1002_v41 }
 0x141   : > { %v990_v62 = vpop.permute.xlu0 %989 }
 0x142   : > { %1033 = vst.msk [vmem:[#allocation3 + $0x28] sm:$0xff] %vm1027_vm8, %v990_v62 }
 0x143   : > { %v1097_v0 = vpop.permute.xlu1 %1096 }
 0x144   : > { %1135 = vst.msk [vmem:[#allocation3 + $0x50] sm:$0xff] %vm1124_vm9, %v1097_v0 }
 0x145   : > { %v1085_v2 = vpop.permute.xlu0 %1084 }
 0x146   : > { %1129 = vst.msk [vmem:[#allocation3 + $0x20] sm:$0xff] %vm1124_vm9, %v1085_v2 }
 0x147   : > { %v714_v4 = vpop.permute.xlu1 %713 }
 0x148   : > { %749 = vst.msk [vmem:[#allocation3 + $0x68] sm:$0xff] %vm735_vm5, %v714_v4 }
 0x149   : > { %v702_v5 = vpop.permute.xlu0 %701 }
 0x14a   : > { %743 = vst.msk [vmem:[#allocation3 + $0x38] sm:$0xff] %vm735_vm5, %v702_v5 }
 0x14b   : > { %v809_v6 = vpop.permute.xlu1 %808 }
 0x14c   : > { %845 = vst.msk [vmem:[#allocation3 + $0x60] sm:$0xff] %vm832_vm6, %v809_v6 }
 0x14d   : > { %v797_v44 = vpop.permute.xlu0 %796 }
 0x14e   : > { %839 = vst.msk [vmem:[#allocation3 + $0x30] sm:$0xff] %vm832_vm6, %v797_v44 }
 0x14f   : > { %v1099_v7 = vpop.permute.xlu1 %1098 }
 0x150   : > { %1136 = vst.msk [vmem:[#allocation3 + $0x58] sm:$0xff] %vm1124_vm9, %v1099_v7 }
 0x151   : > { %v1087_v8 = vpop.permute.xlu0 %1086 }
 0x152   : > { %1130 = vst.msk [vmem:[#allocation3 + $0x28] sm:$0xff] %vm1124_vm9, %v1087_v8 }
 0x153   : > { %v1194_v48 = vpop.permute.xlu1 %1193 }
 0x154   : > { %1232 = vst.msk [vmem:[#allocation3 + $0x50] sm:$0xff] %vm1221_vm10, %v1194_v48 }
 0x155   : > { %v1182_v9 = vpop.permute.xlu0 %1181 }
 0x156   : > { %1226 = vst.msk [vmem:[#allocation3 + $0x20] sm:$0xff] %vm1221_vm10, %v1182_v9 }
 0x157   : > { %v799_v10 = vpop.permute.xlu1 %798 }
 0x158   : > { %840 = vst.msk [vmem:[#allocation3 + $0x38] sm:$0xff] %vm832_vm6, %v799_v10 }
 0x159   : > { %v521_v11 = vpop.permute.xlu0 %520 }
 0x15a   : > { %555 = vst.msk [vmem:[#allocation3 + $0x70] sm:$0xff] %vm540_vm3, %v521_v11 }
 0x15b   : > { %v894_v12 = vpop.permute.xlu1 %893  ;;  %v1248_v50 = vld [vmem:[#allocation3 + $0x50] sm:$0xff] }
 0x15c   : > { %936 = vst.msk [vmem:[#allocation3 + $0x30] sm:$0xff] %vm929_vm7, %v894_v12  ;;  %1975 = vmatprep.mubr.msk.f32.mxu1 %vm1259_vm11, %v1248_v50 }
 0x15d   : > { %v811_v13 = vpop.permute.xlu0 %810  ;;  %v1242_v14 = vld [vmem:[#allocation3 + $0x20] sm:$0xff] }
 0x15e   : > { %846 = vst.msk [vmem:[#allocation3 + $0x68] sm:$0xff] %vm832_vm6, %v811_v13  ;;  %1966 = vmatprep.mubr.msk.f32.mxu0 %vm1259_vm11, %v1242_v14 }
 0x15f   : > { %v1184_v15 = vpop.permute.xlu1 %1183 }
 0x160   : > { %1227 = vst.msk [vmem:[#allocation3 + $0x28] sm:$0xff] %vm1221_vm10, %v1184_v15 }
 0x161   : > { %v906_v29 = vpop.permute.xlu0 %905 }
 0x162   : > { %942 = vst.msk [vmem:[#allocation3 + $0x60] sm:$0xff] %vm929_vm7, %v906_v29 }
 0x163   : > { %v523_v16 = vpop.permute.xlu1 %522 }
 0x164   : > { %556 = vst.msk [vmem:[#allocation3 + $0x78] sm:$0xff] %vm540_vm3, %v523_v16  ;;  %vm1487_vm3 = vcmask 64512  }
 0x165   : > { %v1196_v17 = vpop.permute.xlu0 %1195 }
 0x166   : > { %1233 = vst.msk [vmem:[#allocation3 + $0x58] sm:$0xff] %vm1221_vm10, %v1196_v17 }
 0x167   : > { %v896_v18 = vpop.permute.xlu1 %895  ;;  %v1243_v20 = vld [vmem:[#allocation3 + $0x28] sm:$0xff] }
 0x168   : > { %937 = vst.msk [vmem:[#allocation3 + $0x38] sm:$0xff] %vm929_vm7, %v896_v18  ;;  %1967 = vmatmul.mubr.msk.f32.gmra.mrb[4].mxu0 %vm1259_vm11, %v1243_v20 }
 0x169   : > { %v618_v19 = vpop.permute.xlu0 %617 }
 0x16a   : > { %652 = vst.msk [vmem:[#allocation3 + $0x70] sm:$0xff] %vm637_vm4, %v618_v19 }
 0x16b   : > { %v992_v30 = vpop.permute.xlu1 %991 }
 0x16c   : > { %1034 = vst.msk [vmem:[#allocation3 + $0x30] sm:$0xff] %vm1027_vm8, %v992_v30 }
 0x16d   : > { %v908_v21 = vpop.permute.xlu0 %907  ;;  %v1249_v54 = vld [vmem:[#allocation3 + $0x58] sm:$0xff] }
 0x16e   : > { %943 = vst.msk [vmem:[#allocation3 + $0x68] sm:$0xff] %vm929_vm7, %v908_v21  ;;  %1976 = vmatmul.mubr.msk.f32.gmra.mrb[2].mxu1 %vm1259_vm11, %v1249_v54 }
 0x16f   : > { %v620_v22 = vpop.permute.xlu1 %619 }
 0x170   : > { %653 = vst.msk [vmem:[#allocation3 + $0x78] sm:$0xff] %vm637_vm4, %v620_v22  ;;  %vm1503_vm4 = vcmask 122944  }
 0x171   : > { %v1004_v23 = vpop.permute.xlu0 %1003 }
 0x172   : > { %1040 = vst.msk [vmem:[#allocation3 + $0x60] sm:$0xff] %vm1027_vm8, %v1004_v23 }
 0x173   : > { %v994_v24 = vpop.permute.xlu1 %993 }
 0x174   : > { %1035 = vst.msk [vmem:[#allocation3 + $0x38] sm:$0xff] %vm1027_vm8, %v994_v24 }
 0x175   : > { %v716_v25 = vpop.permute.xlu0 %715 }
 0x176   : > { %750 = vst.msk [vmem:[#allocation3 + $0x70] sm:$0xff] %vm735_vm5, %v716_v25 }
 0x177   : > { %v1089_v26 = vpop.permute.xlu1 %1088 }
 0x178   : > { %1131 = vst.msk [vmem:[#allocation3 + $0x30] sm:$0xff] %vm1124_vm9, %v1089_v26 }
 0x179   : > { %v1006_v63 = vpop.permute.xlu0 %1005 }
 0x17a   : > { %1041 = vst.msk [vmem:[#allocation3 + $0x68] sm:$0xff] %vm1027_vm8, %v1006_v63 }
 0x17b   : > { %v718_v27 = vpop.permute.xlu1 %717 }
 0x17c   : > { %751 = vst.msk [vmem:[#allocation3 + $0x78] sm:$0xff] %vm735_vm5, %v718_v27  ;;  %vm1501_vm5 = vcmask 130113  }
 0x17d   : > { %v1101_v1 = vpop.permute.xlu0 %1100 }
 0x17e   : > { %1137 = vst.msk [vmem:[#allocation3 + $0x60] sm:$0xff] %vm1124_vm9, %v1101_v1 }
 0x17f   : > { %v1091_v28 = vpop.permute.xlu1 %1090 }
 0x180   : > { %1132 = vst.msk [vmem:[#allocation3 + $0x38] sm:$0xff] %vm1124_vm9, %v1091_v28 }
 0x181   : > { %v813_v31 = vpop.permute.xlu0 %812 }
 0x182   : > { %847 = vst.msk [vmem:[#allocation3 + $0x70] sm:$0xff] %vm832_vm6, %v813_v31 }
 0x183   : > { %v1186_v32 = vpop.permute.xlu1 %1185 }
 0x184   : > { %1228 = vst.msk [vmem:[#allocation3 + $0x30] sm:$0xff] %vm1221_vm10, %v1186_v32 }
 0x185   : > { %v1103_v33 = vpop.permute.xlu0 %1102 }
 0x186   : > { %1138 = vst.msk [vmem:[#allocation3 + $0x68] sm:$0xff] %vm1124_vm9, %v1103_v33 }
 0x187   : > { %v815_v3 = vpop.permute.xlu1 %814 }
 0x188   : > { %848 = vst.msk [vmem:[#allocation3 + $0x78] sm:$0xff] %vm832_vm6, %v815_v3  ;;  %vm1517_vm6 = vcmask 195714  }
 0x189   : > { %v1198_v34 = vpop.permute.xlu0 %1197 }
 0x18a   : > { %1234 = vst.msk [vmem:[#allocation3 + $0x60] sm:$0xff] %vm1221_vm10, %v1198_v34 }
 0x18b   : > { %v1188_v35 = vpop.permute.xlu1 %1187  ;;  %v1244_v37 = vld [vmem:[#allocation3 + $0x30] sm:$0xff] }
 0x18c   : > { %1229 = vst.msk [vmem:[#allocation3 + $0x38] sm:$0xff] %vm1221_vm10, %v1188_v35  ;;  %1969 = vmatprep.mubr.msk.f32.mxu0 %vm1259_vm11, %v1244_v37 }
 0x18d   : > { %v910_v36 = vpop.permute.xlu0 %909 }
 0x18e   : > { %944 = vst.msk [vmem:[#allocation3 + $0x70] sm:$0xff] %vm929_vm7, %v910_v36 }
 0x18f   : > { %v912_v42 = vpop.permute.xlu1 %911 }
 0x190   : > { %945 = vst.msk [vmem:[#allocation3 + $0x78] sm:$0xff] %vm929_vm7, %v912_v42  ;;  %vm1519_vm7 = vcmask 189568  }
 0x191   : > { %v1200_v40 = vpop.permute.xlu0 %1199  ;;  %v1250_v43 = vld [vmem:[#allocation3 + $0x60] sm:$0xff] }
 0x192   : > { %1235 = vst.msk [vmem:[#allocation3 + $0x68] sm:$0xff] %vm1221_vm10, %v1200_v40  ;;  %1978 = vmatprep.mubr.msk.f32.mxu1 %vm1259_vm11, %v1250_v43 }
 0x193   : > { %v1010_v47 = vpop.permute.xlu1 %1009  ;;  %v1245_v51 = vld [vmem:[#allocation3 + $0x38] sm:$0xff] }
 0x194   : > { %1043 = vst.msk [vmem:[#allocation3 + $0x78] sm:$0xff] %vm1027_vm8, %v1010_v47  ;;  %1970 = vmatmul.mubr.msk.f32.gmra.mrb[6].mxu0 %vm1259_vm11, %v1245_v51 }
 0x195   : > { %v1008_v46 = vpop.permute.xlu0 %1007 }
 0x196   : > { %1042 = vst.msk [vmem:[#allocation3 + $0x70] sm:$0xff] %vm1027_vm8, %v1008_v46  ;;  %vm1533_vm8 = vcmask 261315  }
 0x197   : > { %v1107_v53 = vpop.permute.xlu1 %1106 }
 0x198   : > { %1140 = vst.msk [vmem:[#allocation3 + $0x78] sm:$0xff] %vm1124_vm9, %v1107_v53 }
 0x199   : > { %v1105_v52 = vpop.permute.xlu0 %1104  ;;  %v1251_v38 = vld [vmem:[#allocation3 + $0x68] sm:$0xff] }
 0x19a   : > { %1139 = vst.msk [vmem:[#allocation3 + $0x70] sm:$0xff] %vm1124_vm9, %v1105_v52  ;;  %1979 = vmatmul.mubr.msk.f32.gmra.mrb[4].mxu1 %vm1259_vm11, %v1251_v38  ;;  %vm1535_vm9 = vcmask 256192  }
 0x19b   : > { %v1204_v55 = vpop.permute.xlu1 %1203 }
 0x19c   : > { %1237 = vst.msk [vmem:[#allocation3 + $0x78] sm:$0xff] %vm1221_vm10, %v1204_v55 }
 0x19d   : > { %v1202_v45 = vpop.permute.xlu0 %1201 }
 0x19e   : > { %1236 = vst.msk [vmem:[#allocation3 + $0x70] sm:$0xff] %vm1221_vm10, %v1202_v45  ;;  %vm1549_vm10 = vcmask 326916  }
 0x1a3   : > { %v1253_v57 = vld [vmem:[#allocation3 + $0x78] sm:$0xff] }
 0x1a5   : > { %v1252_v56 = vld [vmem:[#allocation3 + $0x70] sm:$0xff] }
 0x1a6   : > { %1981 = vmatprep.mubr.msk.f32.mxu1 %vm1259_vm11, %v1252_v56 }
 0x1a7   : > { %1982 = vmatmul.mubr.msk.f32.gmra.mrb[6].mxu1 %vm1259_vm11, %v1253_v57  ;;  %vm1551_vm11 = vcmask 322816  }
 0x1bf   : > { %v2791_v58 = vpop.f32.mrb[0].mxu0 }
 0x1c0   : > { %v1378_v59 = vpop.f32.mrb[1].mxu0 }
 0x1c1   : > { %1591 = vrot.lane.b32.xlu0 %v1378_v59, %s3106_s10  ;;  %s2202_s10 = smov 88  }
 0x1ff   : > { %v1974_v49 = vpop.f32.mrb[0].mxu1 }
 0x200   : > { %v1418_v41 = vpop.f32.mrb[1].mxu1  ;;  %v2820_v29 = vrot.slane %v1974_v49, 4 }
 0x201   : > { %v1965_v39 = vpop.f32.mrb[2].mxu0  ;;  %v2822_v16 = vrot.slane %v1418_v41, 4 }
 0x202   : > { %v1609_v60 = vrot.slane %v1965_v39, 7  ;;  %v1388_v61 = vpop.f32.mrb[3].mxu0 }
 0x203   : > { %v1465_v62 = vrot.slane %v1388_v61, 7 }
 0x204   : > { %v1692_v0 = vsel %vm1481_vm12, %v1609_v60, %v2791_v58  ;;  %v1676_v2 = vsel %vm1478_vm13, %v1609_v60, %v2791_v58  ;;  %v1660_v4 = vsel %vm1475_vm15, %v1609_v60, %v2791_v58  ;;  %v1644_v5 = vsel %vm1472_vm14, %v1609_v60, %v2791_v58 }
 0x205   : > { %v1569_v6 = vsel %vm1484_vm0, %v1465_v62, %v1378_v59  ;;  %v1553_v44 = vsel %vm1481_vm12, %v1465_v62, %v1378_v59  ;;  %v1537_v7 = vsel %vm1478_vm13, %v1465_v62, %v1378_v59  ;;  %v1521_v8 = vsel %vm1475_vm15, %v1465_v62, %v1378_v59 }
 0x206   : > { %1575 = vrot.lane.b32.xlu0 %v1569_v6, %s2196_s16  ;;  %v1505_v48 = vsel %vm1472_vm14, %v1465_v62, %v1378_v59  ;;  %v1489_v9 = vsel %vm1469_vm2, %v1465_v62, %v1378_v59  ;;  %v1628_v10 = vsel %vm1469_vm2, %v1609_v60, %v2791_v58  ;;  %v1610_v11 = vsel %vm1466_vm1, %v1609_v60, %v2791_v58 }
 0x207   : > { %v2815_v12 = vsel %vm1484_vm0, %v1609_v60, %v2791_v58  ;;  %v1467_v13 = vsel %vm1466_vm1, %v1465_v62, %v1378_v59 }
 0x23b   : > { %v1968_v14 = vpop.f32.mrb[4].mxu0 }
 0x23c   : > { %v2818_v50 = vrot.slane %v1968_v14, 6  ;;  %v1398_v15 = vpop.f32.mrb[5].mxu0 }
 0x23d   : > { %v2824_v17 = vrot.slane %v1398_v15, 6 }
 0x23e   : > { %v1693_v18 = vsel %vm1484_vm0, %v2818_v50, %v1692_v0  ;;  %v1677_v19 = vsel %vm1481_vm12, %v2818_v50, %v1676_v2  ;;  %v1661_v20 = vsel %vm1478_vm13, %v2818_v50, %v1660_v4  ;;  %v1645_v30 = vsel %vm1475_vm15, %v2818_v50, %v1644_v5 }
 0x23f   : > { %1698 = vrot.lane.b32.xlu1 %v1693_v18, %s2197_s17  ;;  %v1554_v54 = vsel %vm1484_vm0, %v2824_v17, %v1553_v44  ;;  %v1538_v22 = vsel %vm1481_vm12, %v2824_v17, %v1537_v7  ;;  %v1522_v23 = vsel %vm1478_vm13, %v2824_v17, %v1521_v8  ;;  %v1506_v24 = vsel %vm1475_vm15, %v2824_v17, %v1505_v48 }
 0x240   : > { %1559 = vrot.lane.b32.xlu0 %v1554_v54, %s2198_s15  ;;  %v1490_v63 = vsel %vm1472_vm14, %v2824_v17, %v1489_v9  ;;  %v1629_v27 = vsel %vm1472_vm14, %v2818_v50, %v1628_v10  ;;  %v1612_v1 = vsel %vm1469_vm2, %v2818_v50, %v1610_v11  ;;  %v1585_v31 = vsel %vm1466_vm1, %v2824_v17, %v1465_v62 }
 0x241   : > { %v1977_v21 = vpop.f32.mrb[2].mxu1  ;;  %v1724_v32 = vsel %vm1466_vm1, %v2818_v50, %v1609_v60  ;;  %v1470_v33 = vsel %vm1469_vm2, %v2824_v17, %v1467_v13 }
 0x242   : > { %v2843_v25 = vrot.slane %v1977_v21, 3  ;;  %v1428_v26 = vpop.f32.mrb[3].mxu1 }
 0x243   : > { %v2852_v28 = vrot.slane %v1428_v26, 3 }
 0x244   : > { %v1679_v3 = vsel %vm1466_vm1, %v2843_v25, %v2820_v29 }
 0x245   : > { %v1540_v34 = vsel %vm1466_vm1, %v2852_v28, %v2822_v16 }
 0x267   : > { %v1971_v35 = vpop.f32.mrb[6].mxu0 }
 0x268   : > { %v1613_v36 = vrot.slane %v1971_v35, 5  ;;  %v1408_v37 = vpop.f32.mrb[7].mxu0 }
 0x269   : > { %v1471_v40 = vrot.slane %v1408_v37, 5 }
 0x26a   : > { %v2867_v42 = vsel %vm1484_vm0, %v1613_v36, %v1677_v19  ;;  %v1662_v43 = vsel %vm1481_vm12, %v1613_v36, %v1661_v20  ;;  %v1646_v46 = vsel %vm1478_vm13, %v1613_v36, %v1645_v30  ;;  %v1630_v47 = vsel %vm1475_vm15, %v1613_v36, %v1629_v27 }
 0x26b   : > { %v2873_v52 = vsel %vm1484_vm0, %v1471_v40, %v1538_v22  ;;  %v1523_v53 = vsel %vm1481_vm12, %v1471_v40, %v1522_v23  ;;  %v2878_v38 = vsel %vm1484_vm0, %v2820_v29, %v1662_v43  ;;  %v1507_v45 = vsel %vm1478_vm13, %v1471_v40, %v1506_v24 }
 0x26c   : > { %v2883_v57 = vsel %vm1484_vm0, %v2822_v16, %v1523_v53  ;;  %v1508_v59 = vsel %vm1481_vm12, %v2822_v16, %v1507_v45  ;;  %v1647_v39 = vsel %vm1481_vm12, %v2820_v29, %v1646_v46  ;;  %v1491_v41 = vsel %vm1475_vm15, %v1471_v40, %v1490_v63 }
 0x26d   : > { %v1980_v51 = vpop.f32.mrb[4].mxu1  ;;  %v2891_v60 = vsel %vm1484_vm0, %v2852_v28, %v1508_v59  ;;  %v2895_v61 = vsel %vm1484_vm0, %v2843_v25, %v1647_v39  ;;  %v1492_v2 = vsel %vm1478_vm13, %v2822_v16, %v1491_v41  ;;  %v1631_v4 = vsel %vm1478_vm13, %v2820_v29, %v1630_v47 }
 0x26e   : > { %v1619_v55 = vrot.slane %v1980_v51, 2  ;;  %v1438_v56 = vpop.f32.mrb[5].mxu1  ;;  %v1493_v44 = vsel %vm1481_vm12, %v2852_v28, %v1492_v2  ;;  %v1632_v7 = vsel %vm1481_vm12, %v2843_v25, %v1631_v4  ;;  %v1694_v9 = vsel %vm1466_vm1, %v2820_v29, %v1613_v36 }
 0x26f   : > { %v1480_v49 = vrot.slane %v1438_v56, 2  ;;  %v1555_v10 = vsel %vm1466_vm1, %v2822_v16, %v1471_v40  ;;  %v1695_v11 = vsel %vm1469_vm2, %v2843_v25, %v1694_v9  ;;  %v1614_v14 = vsel %vm1472_vm14, %v1613_v36, %v1612_v1 }
 0x270   : > { %v1664_v62 = vsel %vm1466_vm1, %v1619_v55, %v2843_v25  ;;  %v1680_v0 = vsel %vm1469_vm2, %v1619_v55, %v1679_v3  ;;  %v2916_v48 = vsel %vm1484_vm0, %v1619_v55, %v1632_v7  ;;  %v1556_v13 = vsel %vm1469_vm2, %v2852_v28, %v1555_v10 }
 0x271   : > { %v1525_v5 = vsel %vm1466_vm1, %v1480_v49, %v2852_v28  ;;  %v1541_v6 = vsel %vm1469_vm2, %v1480_v49, %v1540_v34  ;;  %v2913_v8 = vsel %vm1484_vm0, %v1480_v49, %v1493_v44  ;;  %v1570_v15 = vsel %vm1466_vm1, %v1471_v40, %v2824_v17 }
 0x272   : > { %v1696_v18 = vsel %vm1472_vm14, %v1619_v55, %v1695_v11  ;;  %v1557_v19 = vsel %vm1472_vm14, %v1480_v49, %v1556_v13  ;;  %v1616_v20 = vsel %vm1475_vm15, %v2820_v29, %v1614_v14  ;;  %v1571_v30 = vsel %vm1469_vm2, %v2822_v16, %v1570_v15 }
 0x273   : > { %v1618_v21 = vsel %vm1478_vm13, %v2843_v25, %v1616_v20  ;;  %v1572_v54 = vsel %vm1472_vm14, %v2852_v28, %v1571_v30  ;;  %v1709_v22 = vsel %vm1466_vm1, %v1613_v36, %v2818_v50  ;;  %v1586_v17 = vsel %vm1469_vm2, %v1471_v40, %v1585_v31 }
 0x274   : > { %v1620_v23 = vsel %vm1481_vm12, %v1619_v55, %v1618_v21  ;;  %v1573_v24 = vsel %vm1475_vm15, %v1480_v49, %v1572_v54  ;;  %v1710_v26 = vsel %vm1469_vm2, %v2820_v29, %v1709_v22  ;;  %v1587_v63 = vsel %vm1472_vm14, %v2822_v16, %v1586_v17  ;;  %v1920_v17 = vld [vmem:[%s3090_s3] ss:$0 sm:$0xff] }
 0x275   : > { %v1711_v27 = vsel %vm1472_vm14, %v2843_v25, %v1710_v26  ;;  %v1588_v1 = vsel %vm1475_vm15, %v2852_v28, %v1587_v63  ;;  %v1725_v50 = vsel %vm1469_vm2, %v1613_v36, %v1724_v32  ;;  %v1473_v35 = vsel %vm1472_vm14, %v1471_v40, %v1470_v33 }
 0x276   : > { %v1712_v31 = vsel %vm1475_vm15, %v1619_v55, %v1711_v27  ;;  %v1589_v3 = vsel %vm1478_vm13, %v1480_v49, %v1588_v1  ;;  %v1726_v34 = vsel %vm1472_vm14, %v2820_v29, %v1725_v50  ;;  %v1476_v43 = vsel %vm1475_vm15, %v2822_v16, %v1473_v35 }
 0x277   : > { %v1727_v37 = vsel %vm1475_vm15, %v2843_v25, %v1726_v34  ;;  %v1479_v32 = vsel %vm1478_vm13, %v2852_v28, %v1476_v43 }
 0x278   : > { %v1728_v47 = vsel %vm1478_vm13, %v1619_v55, %v1727_v37  ;;  %v1482_v53 = vsel %vm1481_vm12, %v1480_v49, %v1479_v32 }
 0x27a   : > { %v1983_v46 = vpop.f32.mrb[6].mxu1 }
 0x27b   : > { %v1621_v36 = vrot.slane %v1983_v46, 1  ;;  %v1448_v51 = vpop.f32.mrb[7].mxu1 }
 0x27c   : > { %v1483_v45 = vrot.slane %v1448_v51, 1 }
 0x27d   : > { %1636 = vrot.lane.b32.xlu0 %v1621_v36, %s2199_s14  ;;  %v1649_v29 = vsel %vm1466_vm1, %v1621_v36, %v1619_v55  ;;  %v1665_v25 = vsel %vm1469_vm2, %v1621_v36, %v1664_v62  ;;  %v1681_v16 = vsel %vm1472_vm14, %v1621_v36, %v1680_v0  ;;  %v1697_v33 = vsel %vm1475_vm15, %v1621_v36, %v1696_v18 }
 0x27e   : > { %1497 = vrot.lane.b32.xlu1 %v1483_v45, %s3117_s26  ;;  %v1510_v28 = vsel %vm1466_vm1, %v1483_v45, %v1480_v49  ;;  %v1526_v40 = vsel %vm1469_vm2, %v1483_v45, %v1525_v5  ;;  %v1542_v56 = vsel %vm1472_vm14, %v1483_v45, %v1541_v6  ;;  %v1558_v59 = vsel %vm1475_vm15, %v1483_v45, %v1557_v19 }
 0x27f   : > { %v1622_v39 = vsel %vm1484_vm0, %v1621_v36, %v1620_v23  ;;  %v1574_v55 = vsel %vm1478_vm13, %v1483_v45, %v1573_v24  ;;  %v1713_v41 = vsel %vm1478_vm13, %v1621_v36, %v1712_v31  ;;  %v1590_v62 = vsel %vm1481_vm12, %v1483_v45, %v1589_v3 }
 0x280   : > { %v1729_v0 = vsel %vm1481_vm12, %v1621_v36, %v1728_v47  ;;  %v1485_v2 = vsel %vm1484_vm0, %v1483_v45, %v1482_v53  ;;  %vm1565_vm12 = vcmask 392517   ;;  %vm1567_vm13 = vcmask 389440  }
 0x281   : > { %1652 = vrot.lane.b32.xlu0 %v1649_v29, %s2200_s30  ;;  %1488 = vst.msk [vmem:[#allocation4] sm:$0xff] %vm1487_vm3, %v1485_v2  ;;  %vm1581_vm14 = vcmask 458118   ;;  %vm1597_vm15 = vcmask 523719   ;;  %vm1583_vm0 = vcmask 456064   ;;  %vm1599_vm1 = vcmask 522688  }
 0x282   : > { %1682 = vrot.lane.b32.xlu1 %v2867_v42, %s2201_s12  ;;  %v1592_v42 = vpop.permute.xlu0 %1591  ;;  %vm1626_vm2 = vcmask 589312   ;;  %vm1640_vm3 = vcmask 654913  }
 0x285   : > { %1668 = vrot.lane.b32.xlu0 %v1665_v25, %s2202_s10 }
 0x286   : > { %1513 = vrot.lane.b32.xlu1 %v1510_v28, %s3121_s8 }
 0x289   : > { %1684 = vrot.lane.b32.xlu0 %v1681_v16, %s2201_s12 }
 0x28a   : > { %1529 = vrot.lane.b32.xlu1 %v1526_v40, %s3118_s27 }
 0x28d   : > { %1543 = vrot.lane.b32.xlu0 %v2873_v52, %s2194_s9  ;;  %v1576_v52 = vpop.permute.xlu0 %1575 }
 0x28e   : > { %1545 = vrot.lane.b32.xlu1 %v1542_v56, %s2194_s9  ;;  %s2203_s9 = smov 64  }
 0x291   : > { %1527 = vrot.lane.b32.xlu0 %v2883_v57, %s3118_s27  ;;  %s2204_s27 = smov 112  }
 0x292   : > { %1666 = vrot.lane.b32.xlu1 %v2878_v38, %s2202_s10  ;;  %s3122_s10 = smov 56  }
 0x295   : > { %1511 = vrot.lane.b32.xlu0 %v2891_v60, %s3121_s8  ;;  %s2205_s8 = smov 120  }
 0x296   : > { %1650 = vrot.lane.b32.xlu1 %v2895_v61, %s2200_s30  ;;  %s1922_s30 = sshll.u32 %s2173_s22, 1 }
 0x299   : > { %1495 = vrot.lane.b32.xlu0 %v2913_v8, %s3117_s26  ;;  %s360_s26 = scalar_select %p359_p1, %s2169_s21, 1 }
 0x29a   : > { %1634 = vrot.lane.b32.xlu1 %v2916_v48, %s2199_s14 }
 0x29d   : > { %1700 = vrot.lane.b32.xlu0 %v1697_v33, %s2197_s17  ;;  %s318_s17 = sand.u32 1, %s2161_s19  }
 0x29e   : > { %1561 = vrot.lane.b32.xlu1 %v1558_v59, %s2198_s15  ;;  %s1753_s0 = scalar_lea.sflag [#allocation6], %s318_s17 }
 0x2a1   : > { %1623 = vrot.lane.b32.xlu0 %v1622_v39, %s2203_s9 }
 0x2a2   : > { %1577 = vrot.lane.b32.xlu1 %v1574_v55, %s2196_s16  ;;  %s1901_s16 = sshll.u32 %s2314_s13, 1  ;;  %s1895_s13 = sshll.u32 %s318_s17, 3 }
 0x2a3   : > { %s362_s15 = sadd.s32 %s1901_s16, %s360_s26  ;;  %s320_s16 = scalar_lea.vmem [#allocation5], %s1895_s13 }
 0x2a4   : > { %s1902_s14 = sshll.u32 %s362_s15, 3  ;;  %s1768_s1 = sshll.u32 %s320_s16, 4  ;;  %s3036_s1 = int_to_ptr.vmem [resolvable:$true] %s1768_s1 }
 0x2a5   : > { %1716 = vrot.lane.b32.xlu0 %v1713_v41, %s2204_s27  ;;  %s2206_s13 = smov [#allocation5]  }
 0x2a6   : > { %1593 = vrot.lane.b32.xlu1 %v1590_v62, %s3122_s10  ;;  %s1764_s10 = sadd.s32 %s2169_s21, %s1922_s30  ;;  %s2091_s21 = scalar_lea.vmem %s3036_s1, 128 }
 0x2a7   : > { %s1923_s26 = sshll.u32 %s1764_s10, 7  ;;  %p2092_p2 = scmp.ne.s32.totalorder %s3036_s1, %s2091_s21 }
 0x2a8   : > { %s3034_s22 = scalar_lea.hbm %s3092_s5, %s1923_s26 }
 0x2a9   : > { %1732 = vrot.lane.b32.xlu0 %v1729_v0, %s2205_s8  ;;  %p2093_p4 = pnand %p2092_p2, %p2288_p3 }
 0x2aa   : > { %1714 = vrot.lane.b32.xlu1 %v2815_v12, %s2204_s27  ;;  %s364_s27 = scalar_lea.vmem %s3091_s4, %s1902_s14  ;;  %s2095_s14 = sshll.u32 %s2206_s13, 4  ;;  %s2096_s14 = int_to_ptr.vmem [resolvable:$false] %s2095_s14 }
 0x2ab   : > { %v1749_v24 = vld [vmem:[%s364_s27] sm:$0xff]  ;;  %p2094_p5 = pneg %p2093_p4  ;;  %s2097_s30 = scalar_lea.vmem %s2096_s14, 256 }
 0x2ac   : > { %p2098_p6 = scmp.lt.s32.totalorder %s3036_s1, %s2096_s14  ;;  %p2099_p7 = scmp.lt.s32.totalorder %s2097_s30, %s2091_s21 }
 0x2ae   : > { %1730 = vrot.lane.b32.xlu1 %v2791_v58, %s2205_s8  ;;  %p2100_p9 = por %p2099_p7, %p2098_p6 }
 0x2b0   : > { %p2101_p10 = pnand %p2100_p9, %p2094_p5 }
 0x2b1   : > { %v3005_v57 = vpop.permute.xlu1 %1698 }
 0x2b2   : > { %v1560_v38 = vpop.permute.xlu0 %1559 }
 0x2ef   : > { %v1637_v49 = vpop.permute.xlu0 %1636 }
 0x2f0   : > { %v1498_v60 = vpop.permute.xlu1 %1497 }
 0x2f1   : > { %1504 = vst.msk [vmem:[#allocation4 + $0x7] sm:$0x1] %vm1503_vm4, %v1498_v60  ;;  %vm1642_vm4 = vcmask 647744  }
 0x2f3   : > { %v1653_v61 = vpop.permute.xlu0 %1652 }
 0x2f4   : > { %v3007_v4 = vpop.permute.xlu1 %1682 }
 0x2f7   : > { %v3009_v5 = vpop.permute.xlu0 %1668 }
 0x2f8   : > { %v1514_v6 = vpop.permute.xlu1 %1513 }
 0x2fb   : > { %v3011_v44 = vpop.permute.xlu0 %1684 }
 0x2fc   : > { %v1530_v12 = vpop.permute.xlu1 %1529 }
 0x2ff   : > { %v1544_v7 = vpop.permute.xlu0 %1543 }
 0x300   : > { %v1546_v58 = vpop.permute.xlu1 %1545 }
 0x303   : > { %v1528_v8 = vpop.permute.xlu0 %1527 }
 0x304   : > { %v1667_v48 = vpop.permute.xlu1 %1666 }
 0x307   : > { %v1512_v9 = vpop.permute.xlu0 %1511 }
 0x308   : > { %v1651_v10 = vpop.permute.xlu1 %1650 }
 0x30b   : > { %v1496_v11 = vpop.permute.xlu0 %1495 }
 0x30c   : > { %1502 = vst.msk [vmem:[#allocation4 - $0x1] sm:$0xfe] %vm1501_vm5, %v1496_v11  ;;  %v1635_v13 = vpop.permute.xlu1 %1634  ;;  %vm1658_vm5 = vcmask 714368  }
 0x30d   : > { %1518 = vst.msk [vmem:[#allocation4 - $0x2] sm:$0xfc] %vm1517_vm6, %v1512_v9  ;;  %vm1656_vm6 = vcmask 720514  }
 0x30e   : > { %1520 = vst.msk [vmem:[#allocation4 + $0x6] sm:$0x3] %vm1519_vm7, %v1514_v6  ;;  %vm1672_vm7 = vcmask 786115  }
 0x30f   : > { %1534 = vst.msk [vmem:[#allocation4 - $0x3] sm:$0xf8] %vm1533_vm8, %v1528_v8  ;;  %v1701_v14 = vpop.permute.xlu0 %1700  ;;  %vm1674_vm8 = vcmask 780992  }
 0x310   : > { %1536 = vst.msk [vmem:[#allocation4 + $0x5] sm:$0x7] %vm1535_vm9, %v1530_v12  ;;  %v1562_v15 = vpop.permute.xlu1 %1561  ;;  %vm1688_vm9 = vcmask 851716  }
 0x311   : > { %1550 = vst.msk [vmem:[#allocation4 - $0x4] sm:$0xf0] %vm1549_vm10, %v1544_v7  ;;  %vm1690_vm10 = vcmask 847616  }
 0x312   : > { %1552 = vst.msk [vmem:[#allocation4 + $0x4] sm:$0xf] %vm1551_vm11, %v1546_v58  ;;  %vm1704_vm11 = vcmask 917317  }
 0x313   : > { %1566 = vst.msk [vmem:[#allocation4 - $0x5] sm:$0xe0] %vm1565_vm12, %v1560_v38  ;;  %v1624_v18 = vpop.permute.xlu0 %1623  ;;  %vm1706_vm12 = vcmask 914240  }
 0x314   : > { %1568 = vst.msk [vmem:[#allocation4 + $0x3] sm:$0x1f] %vm1567_vm13, %v1562_v15  ;;  %v1578_v19 = vpop.permute.xlu1 %1577  ;;  %vm1720_vm13 = vcmask 982918  }
 0x315   : > { %1582 = vst.msk [vmem:[#allocation4 - $0x6] sm:$0xc0] %vm1581_vm14, %v1576_v52  ;;  %vm1722_vm14 = vcmask 980864  }
 0x316   : > { %1598 = vst.msk [vmem:[#allocation4 - $0x7] sm:$0x80] %vm1597_vm15, %v1592_v42  ;;  %vm1738_vm15 = vcmask 1047488  }
 0x317   : > { %1584 = vst.msk [vmem:[#allocation4 + $0x2] sm:$0x3f] %vm1583_vm0, %v1578_v19  ;;  %v1717_v30 = vpop.permute.xlu0 %1716  ;;  %vm1736_vm0 = vcmask 1048519  }
 0x318   : > { %v1594_v20 = vpop.permute.xlu1 %1593 }
 0x319   : > { %1600 = vst.msk [vmem:[#allocation4 + $0x1] sm:$0x7f] %vm1599_vm1, %v1594_v20 }
 0x31a   : > { %1627 = vst.msk [vmem:[#allocation4] sm:$0xff] %vm1626_vm2, %v1624_v18 }
 0x31b   : > { %1641 = vst.msk [vmem:[#allocation4 - $0x1] sm:$0xfe] %vm1640_vm3, %v1635_v13  ;;  %v1733_v54 = vpop.permute.xlu0 %1732 }
 0x31c   : > { %1643 = vst.msk [vmem:[#allocation4 + $0x7] sm:$0x1] %vm1642_vm4, %v1637_v49  ;;  %v1715_v21 = vpop.permute.xlu1 %1714 }
 0x31d   : > { %1659 = vst.msk [vmem:[#allocation4 + $0x6] sm:$0x3] %vm1658_vm5, %v1653_v61 }
 0x31e   : > { %1657 = vst.msk [vmem:[#allocation4 - $0x2] sm:$0xfc] %vm1656_vm6, %v1651_v10 }
 0x31f   : > { %1673 = vst.msk [vmem:[#allocation4 - $0x3] sm:$0xf8] %vm1672_vm7, %v1667_v48 }
 0x320   : > { %1675 = vst.msk [vmem:[#allocation4 + $0x5] sm:$0x7] %vm1674_vm8, %v3009_v5  ;;  %v1731_v22 = vpop.permute.xlu1 %1730 }
 0x321   : > { %1689 = vst.msk [vmem:[#allocation4 - $0x4] sm:$0xf0] %vm1688_vm9, %v3007_v4 }
 0x322   : > { %1691 = vst.msk [vmem:[#allocation4 + $0x4] sm:$0xf] %vm1690_vm10, %v3011_v44 }
 0x323   : > { %1705 = vst.msk [vmem:[#allocation4 - $0x5] sm:$0xe0] %vm1704_vm11, %v3005_v57 }
 0x324   : > { %1707 = vst.msk [vmem:[#allocation4 + $0x3] sm:$0x1f] %vm1706_vm12, %v1701_v14 }
 0x325   : > { %1721 = vst.msk [vmem:[#allocation4 - $0x6] sm:$0xc0] %vm1720_vm13, %v1715_v21 }
 0x326   : > { %1723 = vst.msk [vmem:[#allocation4 + $0x2] sm:$0x3f] %vm1722_vm14, %v1717_v30 }
 0x327   : > { %1739 = vst.msk [vmem:[#allocation4 + $0x1] sm:$0x7f] %vm1738_vm15, %v1733_v54 }
 0x328   : > { %1737 = vst.msk [vmem:[#allocation4 - $0x7] sm:$0x80] %vm1736_vm0, %v1731_v22 }
 0x32f   : > { %v1740_v23 = vld [vmem:[#allocation4] sm:$0xff] }
 0x330   : > { %v1748_v26 = vadd.f32 %v1920_v17, %v1740_v23 }
 0x332   : > { %v1750_v63 = vadd.f32 %v1749_v24, %v1748_v26 }
 0x334   : > { %1751 = vst [vmem:[%s320_s16] sm:$0xff] %v1750_v63 }
 0x335   : > { %2104 = shalt.err (!%p2101_p10)
}
 0x336   : > { %s2105_s2 = scalar_lea.hbm %s3034_s22, 128  ;;  %s2109_s9 = scalar_lea.hbm %s3092_s5, 512 }
 0x337   : > { %p2106_p11 = scmp.ne.s32.totalorder %s3034_s22, %s2105_s2  ;;  %p2110_p0 = scmp.lt.u32.totalorder %s3034_s22, %s3092_s5 }
 0x338   : > { %p2111_p1 = scmp.lt.u32.totalorder %s2109_s9, %s2105_s2  ;;  %p2113_p4 = scmp.lt.u32.totalorder %s2105_s2, %s3034_s22 }
 0x339   : > { %p2107_p12 = pnand %p2106_p11, %p2288_p3 }
 0x33a   : > { %p2112_p2 = por %p2111_p1, %p2110_p0 }
 0x33b   : > { %p2108_p13 = pneg %p2107_p12 }
 0x33c   : > { %p2114_p5 = por %p2113_p4, %p2112_p2 }
 0x33e   : > { %p2115_p6 = pnand %p2114_p5, %p2108_p13 }
 0x340   : > { %2118 = shalt.err (!%p2115_p6)
}
 0x341   : > { %2001 = dma.vmem_to_hbm [thread:$0]  (%p2288_p3), %s3036_s1, 128, %s3034_s22, %s1753_s0  }
 0x342 PF: > { %p2007_p7 = scmp.ge.s32.totalorder %s2185_s25, 2  ;;  %s1780_s8 = sand.u32 1, %s2157_s18  }
 0x343   : > { %s1781_s26 = scalar_lea.sflag [#allocation6], %s1780_s8 }
 0x344   : > { %p2004_p9 = pnand %p2007_p7, %p2297_p8 }
 0x346   : > { %2152 = dma.done.wait (!%p2004_p9), %s1781_s26, 128  }
 0x347   : > { %2154 = vsyncadd (!%p2004_p9), %s1781_s26, 4294967168  ;;  %s18_s25 = sadd.s32 1, %s2185_s25   ;;  %s3123_s18 = smov %s2161_s19 }
 0x348   : > { %p15_p10 = scmp.ge.s32.totalorder %s18_s25, 6   ;;  %s3124_s19 = smov %s2165_s20 }
 0x349   : > { %s3125_s20 = smov %s2306_s11  ;;  %s3126_s21 = smov %s2177_s23 }
 0x34a   : > { %s3127_s22 = smov %s2181_s24  ;;  %s3128_s23 = smov %s3131_s28 }
 0x34b   : > { %s3129_s24 = smov %s3135_s29  ;;  %17 = sbr.rel (!%p15_p10) target bundleno = 9 (0x9), region = 84 }
 0x352   :  { %1786 = vsyncpa [#allocation6], 1 }
 0x353   :  { %1788 = vsyncpa [#allocation6 + $0x1], 1 }

</bundles_post_ra>
